<compile_context>
chip_gen: v6e
topology: v6e:2x2x1
jax: 0.10.0
libtpu: 0.0.40
codegen_flags: <defaults>
</compile_context>

<pallas_src>
import functools
import math

import jax
import jax.numpy as jnp
from jax import lax
from jax.experimental import pallas as pl
from jax.experimental.pallas import tpu as pltpu


def _mha_kernel(key_ref, query_ref, w_ref, b_ref, out_ref, *, d_feat, h, B, Sk, Sq):
    """Single grid point: all batches, both feature sets, all heads."""
    scale = 1.0 / math.sqrt(d_feat)
    D = d_feat
    hD = h * D
    Mk = B * Sk

    kf = key_ref[...]          # [B*Sk, Din]
    qf = query_ref[...]        # [B*Sq, Din]
    W = w_ref[...]             # [Din, 3*h*D]   layout: [Q heads | K heads | V heads]
    b = b_ref[...]             # [1, 3*h*D]

    # One fused projection for all batches, both feature sets, all heads, Q/K/V.
    x_all = jnp.concatenate([kf, qf], axis=0)                       # [B*(Sk+Sq), Din]
    qkv_all = lax.dot_general(
        x_all, W, (((1,), (0,)), ((), ())),
        preferred_element_type=jnp.float32) + b                     # [B*(Sk+Sq), 3hD]
    qkv_k = qkv_all[:Mk]       # [B*Sk, 3hD]
    qkv_q = qkv_all[Mk:]       # [B*Sq, 3hD]

    def self_attn(qkv, S):
        """Per-(batch, head) self-attention from the fused projection."""
        zs = []
        for bb in range(B):                                  # B, h small & static -> unrolled
            blk = qkv[bb * S:(bb + 1) * S]                   # [S, 3hD]
            row = []
            for i in range(h):
                q = blk[:, i * D:(i + 1) * D]                # [S, D]
                k = blk[:, hD + i * D: hD + (i + 1) * D]
                v = blk[:, 2 * hD + i * D: 2 * hD + (i + 1) * D]
                # scores: contract last dims of q and k (no explicit transpose)
                s = lax.dot_general(
                    q, k, (((1,), (1,)), ((), ())),
                    preferred_element_type=jnp.float32) * scale      # [S, S]
                # numerically-stable softmax along last dim (== torch dim=2), exact divide
                m = jnp.max(s, axis=-1, keepdims=True)
                e = jnp.exp(s - m)
                p = e / jnp.sum(e, axis=-1, keepdims=True)
                row.append(jnp.dot(p, v, preferred_element_type=jnp.float32))  # [S, D]
            zs.append(row)
        return zs

    z_k = self_attn(qkv_k, Sk)     # [B][h] of [Sk, D]
    z_q = self_attn(qkv_q, Sq)     # [B][h] of [Sq, D]

    for bb in range(B):
        corrs = [
            lax.dot_general(
                z_q[bb][i], z_k[bb][i], (((1,), (1,)), ((), ())),
                preferred_element_type=jnp.float32) * scale          # [Sq, Sk]
            for i in range(h)
        ]
        # head-major concat along the lane dim -> single lane-dense store per batch
        out_ref[bb] = jnp.concatenate(corrs, axis=-1).astype(out_ref.dtype)   # [Sq, h*Sk]


def fuse_qkv_params(Wq, Bq, Wk, Bk, Wv, Bv):
    """One-time (module-init) fusion of per-head weights into [Din, 3*h*D] / [1, 3*h*D]."""
    h, Din, D = Wq.shape
    hD = h * D

    def flatten(W):     # [h, Din, D] -> [Din, h*D] (head-major columns)
        return jnp.transpose(W, (1, 0, 2)).reshape(Din, hD)

    W_all = jnp.concatenate([flatten(Wq), flatten(Wk), flatten(Wv)], axis=1)   # [Din, 3hD]
    b_all = jnp.concatenate(
        [Bq.reshape(1, hD), Bk.reshape(1, hD), Bv.reshape(1, hD)], axis=1)     # [1, 3hD]
    return W_all, b_all


@functools.partial(jax.jit, static_argnames=("d_feat", "h"))
def multihead_attention(key_feat, query_feat, W_all, b_all, *, d_feat, h):
    """key_feat [B,Sk,Din], query_feat [B,Sq,Din], W_all [Din,3*h*d], b_all [1,3*h*d]."""
    B, Sk, Din = key_feat.shape
    _, Sq, _ = query_feat.shape
    hD = h * d_feat

    # Free row-major reshapes: fold batch into the matmul M dimension.
    key2d = key_feat.reshape(B * Sk, Din)
    query2d = query_feat.reshape(B * Sq, Din)

    kernel = functools.partial(_mha_kernel, d_feat=d_feat, h=h, B=B, Sk=Sk, Sq=Sq)

    out = pl.pallas_call(
        kernel,
        out_shape=jax.ShapeDtypeStruct((B, Sq, h * Sk), jnp.float32),
        grid=(1,),
        in_specs=[
            pl.BlockSpec((B * Sk, Din), lambda i: (0, 0)),
            pl.BlockSpec((B * Sq, Din), lambda i: (0, 0)),
            pl.BlockSpec((Din, 3 * hD), lambda i: (0, 0)),
            pl.BlockSpec((1, 3 * hD), lambda i: (0, 0)),
        ],
        out_specs=pl.BlockSpec((B, Sq, h * Sk), lambda i: (0, 0, 0)),
    )(key2d, query2d, W_all, b_all)

    return out   # already [B, Sq, h*Sk], no transpose/reshape glue needed


def _reference(key_feat, query_feat, Wq, Bq, Wk, Bk, Wv, Bv, *, d_feat, h):
    """Pure-JAX reference mirroring the torch forward."""
    scale = 1.0 / math.sqrt(d_feat)
    outs = []
    for i in range(h):
        def attn(x):
            q = x @ Wq[i] + Bq[i]
            k = x @ Wk[i] + Bk[i]
            v = x @ Wv[i] + Bv[i]
            s = jnp.einsum('bsd,btd->bst', q, k) * scale
            p = jax.nn.softmax(s, axis=2)
            return jnp.einsum('bst,btd->bsd', p, v)
        z_k = attn(key_feat)
        z_q = attn(query_feat)
        outs.append(jnp.einsum('bqd,bkd->bqk', z_q, z_k) * scale)
    return jnp.concatenate(outs, axis=2)


if __name__ == "__main__":
    # small shapes consistent with the module's forward (3-D inputs for bmm)
    B, Sk, Sq, dim_in = 2, 8, 8, 32
    d_feat, h = 64, 4

    key = jax.random.PRNGKey(0)
    k1, k2, k3, k4, k5 = jax.random.split(key, 5)

    key_feat = jax.random.normal(k1, (B, Sk, dim_in), dtype=jnp.float32)
    query_feat = jax.random.normal(k2, (B, Sq, dim_in), dtype=jnp.float32)

    # torch init: weight ~ N(0, 0.01), bias = 0; stored as [h, dim_in, d_feat]
    # (already transposed vs. torch Linear.weight).
    Wq = 0.01 * jax.random.normal(k3, (h, dim_in, d_feat), dtype=jnp.float32)
    Wk = 0.01 * jax.random.normal(k4, (h, dim_in, d_feat), dtype=jnp.float32)
    Wv = 0.01 * jax.random.normal(k5, (h, dim_in, d_feat), dtype=jnp.float32)
    Bq = jnp.zeros((h, d_feat), dtype=jnp.float32)
    Bk = jnp.zeros((h, d_feat), dtype=jnp.float32)
    Bv = jnp.zeros((h, d_feat), dtype=jnp.float32)

    # One-time parameter fusion (module init analog) -- NOT paid per forward.
    W_all, b_all = fuse_qkv_params(Wq, Bq, Wk, Bk, Wv, Bv)
    W_all, b_all = jax.block_until_ready((W_all, b_all))

    out = multihead_attention(key_feat, query_feat, W_all, b_all, d_feat=d_feat, h=h)
    out = jax.block_until_ready(out)

    ref = _reference(key_feat, query_feat, Wq, Bq, Wk, Bk, Wv, Bv, d_feat=d_feat, h=h)
    assert out.shape == (B, Sq, h * Sk), out.shape
    # tighter than before: softmax uses an exact divide now (no approx reciprocal);
    # remaining diff is only MXU vs XLA matmul rounding.
    assert jnp.allclose(out, ref, atol=1e-4, rtol=1e-2), \
        f"mismatch vs reference, max abs diff {jnp.max(jnp.abs(out - ref))}"

    print("KERNEL_OK")
</pallas_src>

<mosaic_0001>
module attributes {stable_mosaic.version = 11 : i64} {
  func.func @_mha_kernel(%arg0: i32, %arg1: memref<16x32xf32, #tpu.memory_space<vmem>>, %arg2: memref<16x32xf32, #tpu.memory_space<vmem>>, %arg3: memref<32x768xf32, #tpu.memory_space<vmem>>, %arg4: memref<1x768xf32, #tpu.memory_space<vmem>>, %arg5: memref<2x8x32xf32, #tpu.memory_space<vmem>>) attributes {dimension_semantics = [#tpu.dimension_semantics<arbitrary>], iteration_bounds = array<i64: 1>, scalar_prefetch = 0 : i64, scratch_operands = 0 : i64, tpu.core_type = #tpu.core_type<tc>, window_params = [{pipeline_mode = #tpu.pipeline_mode<synchronous>, transform_indices = @transform_0, window_bounds = array<i64: 16, 32>}, {pipeline_mode = #tpu.pipeline_mode<synchronous>, transform_indices = @transform_1, window_bounds = array<i64: 16, 32>}, {pipeline_mode = #tpu.pipeline_mode<synchronous>, transform_indices = @transform_2, window_bounds = array<i64: 32, 768>}, {pipeline_mode = #tpu.pipeline_mode<synchronous>, transform_indices = @transform_3, window_bounds = array<i64: 1, 768>}, {pipeline_mode = #tpu.pipeline_mode<synchronous>, transform_indices = @transform_4, window_bounds = array<i64: 2, 8, 32>}]} {
    %c0 = arith.constant 0 : index
    %c0_0 = arith.constant 0 : index
    %0 = vector.load %arg1[%c0, %c0_0] : memref<16x32xf32, #tpu.memory_space<vmem>>, vector<16x32xf32>
    %c0_1 = arith.constant 0 : index
    %c0_2 = arith.constant 0 : index
    %1 = vector.load %arg2[%c0_1, %c0_2] : memref<16x32xf32, #tpu.memory_space<vmem>>, vector<16x32xf32>
    %c0_3 = arith.constant 0 : index
    %c0_4 = arith.constant 0 : index
    %2 = vector.load %arg3[%c0_3, %c0_4] : memref<32x768xf32, #tpu.memory_space<vmem>>, vector<32x768xf32>
    %c0_5 = arith.constant 0 : index
    %c0_6 = arith.constant 0 : index
    %3 = vector.load %arg4[%c0_5, %c0_6] : memref<1x768xf32, #tpu.memory_space<vmem>>, vector<1x768xf32>
    %4 = tpu.concatenate %0, %1 in 0 : vector<16x32xf32>, vector<16x32xf32> -> vector<32x32xf32>
    %cst = arith.constant dense<0.000000e+00> : vector<32x768xf32>
    %5 = tpu.matmul %4, %2, %cst {dimension_numbers = #tpu.dot_dimension_numbers<[1], [0], [0], [1], [0, 0, 1, 1], [], []>} : vector<32x32xf32>, vector<32x768xf32>, vector<32x768xf32> -> vector<32x768xf32>
    %6 = vector.broadcast %3 : vector<1x768xf32> to vector<32x768xf32>
    %7 = arith.addf %5, %6 : vector<32x768xf32>
    %8 = vector.extract_strided_slice %7 {offsets = [0, 0], sizes = [16, 768], strides = [1, 1]} : vector<32x768xf32> to vector<16x768xf32>
    %9 = vector.extract_strided_slice %7 {offsets = [16, 0], sizes = [16, 768], strides = [1, 1]} : vector<32x768xf32> to vector<16x768xf32>
    %10 = vector.extract_strided_slice %8 {offsets = [0, 0], sizes = [8, 768], strides = [1, 1]} : vector<16x768xf32> to vector<8x768xf32>
    %11 = vector.extract_strided_slice %10 {offsets = [0, 0], sizes = [8, 64], strides = [1, 1]} : vector<8x768xf32> to vector<8x64xf32>
    %12 = vector.extract_strided_slice %10 {offsets = [0, 256], sizes = [8, 64], strides = [1, 1]} : vector<8x768xf32> to vector<8x64xf32>
    %13 = vector.extract_strided_slice %10 {offsets = [0, 512], sizes = [8, 64], strides = [1, 1]} : vector<8x768xf32> to vector<8x64xf32>
    %cst_7 = arith.constant dense<0.000000e+00> : vector<8x8xf32>
    %14 = tpu.matmul %11, %12, %cst_7 {dimension_numbers = #tpu.dot_dimension_numbers<[1], [1], [0], [0], [0, 0, 1, 0], [], []>} : vector<8x64xf32>, vector<8x64xf32>, vector<8x8xf32> -> vector<8x8xf32>
    %cst_8 = arith.constant 1.250000e-01 : f32
    %15 = vector.broadcast %cst_8 : f32 to vector<8x8xf32>
    %16 = arith.mulf %14, %15 : vector<8x8xf32>
    %cst_9 = arith.constant dense<0xFF800000> : vector<8xf32>
    %17 = vector.multi_reduction <maximumf>, %16, %cst_9 [1] : vector<8x8xf32> to vector<8xf32>
    %18 = vector.shape_cast %17 : vector<8xf32> to vector<8x1xf32>
    %19 = vector.broadcast %18 : vector<8x1xf32> to vector<8x8xf32>
    %20 = arith.subf %16, %19 : vector<8x8xf32>
    %21 = math.exp %20 : vector<8x8xf32>
    %cst_10 = arith.constant dense<0.000000e+00> : vector<8xf32>
    %22 = vector.multi_reduction <add>, %21, %cst_10 [1] : vector<8x8xf32> to vector<8xf32>
    %23 = vector.shape_cast %22 : vector<8xf32> to vector<8x1xf32>
    %24 = vector.broadcast %23 : vector<8x1xf32> to vector<8x8xf32>
    %25 = arith.divf %21, %24 : vector<8x8xf32>
    %cst_11 = arith.constant dense<0.000000e+00> : vector<8x64xf32>
    %26 = tpu.matmul %25, %13, %cst_11 {dimension_numbers = #tpu.dot_dimension_numbers<[1], [0], [0], [1], [0, 0, 1, 1], [], []>} : vector<8x8xf32>, vector<8x64xf32>, vector<8x64xf32> -> vector<8x64xf32>
    %27 = vector.extract_strided_slice %10 {offsets = [0, 64], sizes = [8, 64], strides = [1, 1]} : vector<8x768xf32> to vector<8x64xf32>
    %28 = vector.extract_strided_slice %10 {offsets = [0, 320], sizes = [8, 64], strides = [1, 1]} : vector<8x768xf32> to vector<8x64xf32>
    %29 = vector.extract_strided_slice %10 {offsets = [0, 576], sizes = [8, 64], strides = [1, 1]} : vector<8x768xf32> to vector<8x64xf32>
    %cst_12 = arith.constant dense<0.000000e+00> : vector<8x8xf32>
    %30 = tpu.matmul %27, %28, %cst_12 {dimension_numbers = #tpu.dot_dimension_numbers<[1], [1], [0], [0], [0, 0, 1, 0], [], []>} : vector<8x64xf32>, vector<8x64xf32>, vector<8x8xf32> -> vector<8x8xf32>
    %cst_13 = arith.constant 1.250000e-01 : f32
    %31 = vector.broadcast %cst_13 : f32 to vector<8x8xf32>
    %32 = arith.mulf %30, %31 : vector<8x8xf32>
    %cst_14 = arith.constant dense<0xFF800000> : vector<8xf32>
    %33 = vector.multi_reduction <maximumf>, %32, %cst_14 [1] : vector<8x8xf32> to vector<8xf32>
    %34 = vector.shape_cast %33 : vector<8xf32> to vector<8x1xf32>
    %35 = vector.broadcast %34 : vector<8x1xf32> to vector<8x8xf32>
    %36 = arith.subf %32, %35 : vector<8x8xf32>
    %37 = math.exp %36 : vector<8x8xf32>
    %cst_15 = arith.constant dense<0.000000e+00> : vector<8xf32>
    %38 = vector.multi_reduction <add>, %37, %cst_15 [1] : vector<8x8xf32> to vector<8xf32>
    %39 = vector.shape_cast %38 : vector<8xf32> to vector<8x1xf32>
    %40 = vector.broadcast %39 : vector<8x1xf32> to vector<8x8xf32>
    %41 = arith.divf %37, %40 : vector<8x8xf32>
    %cst_16 = arith.constant dense<0.000000e+00> : vector<8x64xf32>
    %42 = tpu.matmul %41, %29, %cst_16 {dimension_numbers = #tpu.dot_dimension_numbers<[1], [0], [0], [1], [0, 0, 1, 1], [], []>} : vector<8x8xf32>, vector<8x64xf32>, vector<8x64xf32> -> vector<8x64xf32>
    %43 = vector.extract_strided_slice %10 {offsets = [0, 128], sizes = [8, 64], strides = [1, 1]} : vector<8x768xf32> to vector<8x64xf32>
    %44 = vector.extract_strided_slice %10 {offsets = [0, 384], sizes = [8, 64], strides = [1, 1]} : vector<8x768xf32> to vector<8x64xf32>
    %45 = vector.extract_strided_slice %10 {offsets = [0, 640], sizes = [8, 64], strides = [1, 1]} : vector<8x768xf32> to vector<8x64xf32>
    %cst_17 = arith.constant dense<0.000000e+00> : vector<8x8xf32>
    %46 = tpu.matmul %43, %44, %cst_17 {dimension_numbers = #tpu.dot_dimension_numbers<[1], [1], [0], [0], [0, 0, 1, 0], [], []>} : vector<8x64xf32>, vector<8x64xf32>, vector<8x8xf32> -> vector<8x8xf32>
    %cst_18 = arith.constant 1.250000e-01 : f32
    %47 = vector.broadcast %cst_18 : f32 to vector<8x8xf32>
    %48 = arith.mulf %46, %47 : vector<8x8xf32>
    %cst_19 = arith.constant dense<0xFF800000> : vector<8xf32>
    %49 = vector.multi_reduction <maximumf>, %48, %cst_19 [1] : vector<8x8xf32> to vector<8xf32>
    %50 = vector.shape_cast %49 : vector<8xf32> to vector<8x1xf32>
    %51 = vector.broadcast %50 : vector<8x1xf32> to vector<8x8xf32>
    %52 = arith.subf %48, %51 : vector<8x8xf32>
    %53 = math.exp %52 : vector<8x8xf32>
    %cst_20 = arith.constant dense<0.000000e+00> : vector<8xf32>
    %54 = vector.multi_reduction <add>, %53, %cst_20 [1] : vector<8x8xf32> to vector<8xf32>
    %55 = vector.shape_cast %54 : vector<8xf32> to vector<8x1xf32>
    %56 = vector.broadcast %55 : vector<8x1xf32> to vector<8x8xf32>
    %57 = arith.divf %53, %56 : vector<8x8xf32>
    %cst_21 = arith.constant dense<0.000000e+00> : vector<8x64xf32>
    %58 = tpu.matmul %57, %45, %cst_21 {dimension_numbers = #tpu.dot_dimension_numbers<[1], [0], [0], [1], [0, 0, 1, 1], [], []>} : vector<8x8xf32>, vector<8x64xf32>, vector<8x64xf32> -> vector<8x64xf32>
    %59 = vector.extract_strided_slice %10 {offsets = [0, 192], sizes = [8, 64], strides = [1, 1]} : vector<8x768xf32> to vector<8x64xf32>
    %60 = vector.extract_strided_slice %10 {offsets = [0, 448], sizes = [8, 64], strides = [1, 1]} : vector<8x768xf32> to vector<8x64xf32>
    %61 = vector.extract_strided_slice %10 {offsets = [0, 704], sizes = [8, 64], strides = [1, 1]} : vector<8x768xf32> to vector<8x64xf32>
    %cst_22 = arith.constant dense<0.000000e+00> : vector<8x8xf32>
    %62 = tpu.matmul %59, %60, %cst_22 {dimension_numbers = #tpu.dot_dimension_numbers<[1], [1], [0], [0], [0, 0, 1, 0], [], []>} : vector<8x64xf32>, vector<8x64xf32>, vector<8x8xf32> -> vector<8x8xf32>
    %cst_23 = arith.constant 1.250000e-01 : f32
    %63 = vector.broadcast %cst_23 : f32 to vector<8x8xf32>
    %64 = arith.mulf %62, %63 : vector<8x8xf32>
    %cst_24 = arith.constant dense<0xFF800000> : vector<8xf32>
    %65 = vector.multi_reduction <maximumf>, %64, %cst_24 [1] : vector<8x8xf32> to vector<8xf32>
    %66 = vector.shape_cast %65 : vector<8xf32> to vector<8x1xf32>
    %67 = vector.broadcast %66 : vector<8x1xf32> to vector<8x8xf32>
    %68 = arith.subf %64, %67 : vector<8x8xf32>
    %69 = math.exp %68 : vector<8x8xf32>
    %cst_25 = arith.constant dense<0.000000e+00> : vector<8xf32>
    %70 = vector.multi_reduction <add>, %69, %cst_25 [1] : vector<8x8xf32> to vector<8xf32>
    %71 = vector.shape_cast %70 : vector<8xf32> to vector<8x1xf32>
    %72 = vector.broadcast %71 : vector<8x1xf32> to vector<8x8xf32>
    %73 = arith.divf %69, %72 : vector<8x8xf32>
    %cst_26 = arith.constant dense<0.000000e+00> : vector<8x64xf32>
    %74 = tpu.matmul %73, %61, %cst_26 {dimension_numbers = #tpu.dot_dimension_numbers<[1], [0], [0], [1], [0, 0, 1, 1], [], []>} : vector<8x8xf32>, vector<8x64xf32>, vector<8x64xf32> -> vector<8x64xf32>
    %75 = vector.extract_strided_slice %8 {offsets = [8, 0], sizes = [8, 768], strides = [1, 1]} : vector<16x768xf32> to vector<8x768xf32>
    %76 = vector.extract_strided_slice %75 {offsets = [0, 0], sizes = [8, 64], strides = [1, 1]} : vector<8x768xf32> to vector<8x64xf32>
    %77 = vector.extract_strided_slice %75 {offsets = [0, 256], sizes = [8, 64], strides = [1, 1]} : vector<8x768xf32> to vector<8x64xf32>
    %78 = vector.extract_strided_slice %75 {offsets = [0, 512], sizes = [8, 64], strides = [1, 1]} : vector<8x768xf32> to vector<8x64xf32>
    %cst_27 = arith.constant dense<0.000000e+00> : vector<8x8xf32>
    %79 = tpu.matmul %76, %77, %cst_27 {dimension_numbers = #tpu.dot_dimension_numbers<[1], [1], [0], [0], [0, 0, 1, 0], [], []>} : vector<8x64xf32>, vector<8x64xf32>, vector<8x8xf32> -> vector<8x8xf32>
    %cst_28 = arith.constant 1.250000e-01 : f32
    %80 = vector.broadcast %cst_28 : f32 to vector<8x8xf32>
    %81 = arith.mulf %79, %80 : vector<8x8xf32>
    %cst_29 = arith.constant dense<0xFF800000> : vector<8xf32>
    %82 = vector.multi_reduction <maximumf>, %81, %cst_29 [1] : vector<8x8xf32> to vector<8xf32>
    %83 = vector.shape_cast %82 : vector<8xf32> to vector<8x1xf32>
    %84 = vector.broadcast %83 : vector<8x1xf32> to vector<8x8xf32>
    %85 = arith.subf %81, %84 : vector<8x8xf32>
    %86 = math.exp %85 : vector<8x8xf32>
    %cst_30 = arith.constant dense<0.000000e+00> : vector<8xf32>
    %87 = vector.multi_reduction <add>, %86, %cst_30 [1] : vector<8x8xf32> to vector<8xf32>
    %88 = vector.shape_cast %87 : vector<8xf32> to vector<8x1xf32>
    %89 = vector.broadcast %88 : vector<8x1xf32> to vector<8x8xf32>
    %90 = arith.divf %86, %89 : vector<8x8xf32>
    %cst_31 = arith.constant dense<0.000000e+00> : vector<8x64xf32>
    %91 = tpu.matmul %90, %78, %cst_31 {dimension_numbers = #tpu.dot_dimension_numbers<[1], [0], [0], [1], [0, 0, 1, 1], [], []>} : vector<8x8xf32>, vector<8x64xf32>, vector<8x64xf32> -> vector<8x64xf32>
    %92 = vector.extract_strided_slice %75 {offsets = [0, 64], sizes = [8, 64], strides = [1, 1]} : vector<8x768xf32> to vector<8x64xf32>
    %93 = vector.extract_strided_slice %75 {offsets = [0, 320], sizes = [8, 64], strides = [1, 1]} : vector<8x768xf32> to vector<8x64xf32>
    %94 = vector.extract_strided_slice %75 {offsets = [0, 576], sizes = [8, 64], strides = [1, 1]} : vector<8x768xf32> to vector<8x64xf32>
    %cst_32 = arith.constant dense<0.000000e+00> : vector<8x8xf32>
    %95 = tpu.matmul %92, %93, %cst_32 {dimension_numbers = #tpu.dot_dimension_numbers<[1], [1], [0], [0], [0, 0, 1, 0], [], []>} : vector<8x64xf32>, vector<8x64xf32>, vector<8x8xf32> -> vector<8x8xf32>
    %cst_33 = arith.constant 1.250000e-01 : f32
    %96 = vector.broadcast %cst_33 : f32 to vector<8x8xf32>
    %97 = arith.mulf %95, %96 : vector<8x8xf32>
    %cst_34 = arith.constant dense<0xFF800000> : vector<8xf32>
    %98 = vector.multi_reduction <maximumf>, %97, %cst_34 [1] : vector<8x8xf32> to vector<8xf32>
    %99 = vector.shape_cast %98 : vector<8xf32> to vector<8x1xf32>
    %100 = vector.broadcast %99 : vector<8x1xf32> to vector<8x8xf32>
    %101 = arith.subf %97, %100 : vector<8x8xf32>
    %102 = math.exp %101 : vector<8x8xf32>
    %cst_35 = arith.constant dense<0.000000e+00> : vector<8xf32>
    %103 = vector.multi_reduction <add>, %102, %cst_35 [1] : vector<8x8xf32> to vector<8xf32>
    %104 = vector.shape_cast %103 : vector<8xf32> to vector<8x1xf32>
    %105 = vector.broadcast %104 : vector<8x1xf32> to vector<8x8xf32>
    %106 = arith.divf %102, %105 : vector<8x8xf32>
    %cst_36 = arith.constant dense<0.000000e+00> : vector<8x64xf32>
    %107 = tpu.matmul %106, %94, %cst_36 {dimension_numbers = #tpu.dot_dimension_numbers<[1], [0], [0], [1], [0, 0, 1, 1], [], []>} : vector<8x8xf32>, vector<8x64xf32>, vector<8x64xf32> -> vector<8x64xf32>
    %108 = vector.extract_strided_slice %75 {offsets = [0, 128], sizes = [8, 64], strides = [1, 1]} : vector<8x768xf32> to vector<8x64xf32>
    %109 = vector.extract_strided_slice %75 {offsets = [0, 384], sizes = [8, 64], strides = [1, 1]} : vector<8x768xf32> to vector<8x64xf32>
    %110 = vector.extract_strided_slice %75 {offsets = [0, 640], sizes = [8, 64], strides = [1, 1]} : vector<8x768xf32> to vector<8x64xf32>
    %cst_37 = arith.constant dense<0.000000e+00> : vector<8x8xf32>
    %111 = tpu.matmul %108, %109, %cst_37 {dimension_numbers = #tpu.dot_dimension_numbers<[1], [1], [0], [0], [0, 0, 1, 0], [], []>} : vector<8x64xf32>, vector<8x64xf32>, vector<8x8xf32> -> vector<8x8xf32>
    %cst_38 = arith.constant 1.250000e-01 : f32
    %112 = vector.broadcast %cst_38 : f32 to vector<8x8xf32>
    %113 = arith.mulf %111, %112 : vector<8x8xf32>
    %cst_39 = arith.constant dense<0xFF800000> : vector<8xf32>
    %114 = vector.multi_reduction <maximumf>, %113, %cst_39 [1] : vector<8x8xf32> to vector<8xf32>
    %115 = vector.shape_cast %114 : vector<8xf32> to vector<8x1xf32>
    %116 = vector.broadcast %115 : vector<8x1xf32> to vector<8x8xf32>
    %117 = arith.subf %113, %116 : vector<8x8xf32>
    %118 = math.exp %117 : vector<8x8xf32>
    %cst_40 = arith.constant dense<0.000000e+00> : vector<8xf32>
    %119 = vector.multi_reduction <add>, %118, %cst_40 [1] : vector<8x8xf32> to vector<8xf32>
    %120 = vector.shape_cast %119 : vector<8xf32> to vector<8x1xf32>
    %121 = vector.broadcast %120 : vector<8x1xf32> to vector<8x8xf32>
    %122 = arith.divf %118, %121 : vector<8x8xf32>
    %cst_41 = arith.constant dense<0.000000e+00> : vector<8x64xf32>
    %123 = tpu.matmul %122, %110, %cst_41 {dimension_numbers = #tpu.dot_dimension_numbers<[1], [0], [0], [1], [0, 0, 1, 1], [], []>} : vector<8x8xf32>, vector<8x64xf32>, vector<8x64xf32> -> vector<8x64xf32>
    %124 = vector.extract_strided_slice %75 {offsets = [0, 192], sizes = [8, 64], strides = [1, 1]} : vector<8x768xf32> to vector<8x64xf32>
    %125 = vector.extract_strided_slice %75 {offsets = [0, 448], sizes = [8, 64], strides = [1, 1]} : vector<8x768xf32> to vector<8x64xf32>
    %126 = vector.extract_strided_slice %75 {offsets = [0, 704], sizes = [8, 64], strides = [1, 1]} : vector<8x768xf32> to vector<8x64xf32>
    %cst_42 = arith.constant dense<0.000000e+00> : vector<8x8xf32>
    %127 = tpu.matmul %124, %125, %cst_42 {dimension_numbers = #tpu.dot_dimension_numbers<[1], [1], [0], [0], [0, 0, 1, 0], [], []>} : vector<8x64xf32>, vector<8x64xf32>, vector<8x8xf32> -> vector<8x8xf32>
    %cst_43 = arith.constant 1.250000e-01 : f32
    %128 = vector.broadcast %cst_43 : f32 to vector<8x8xf32>
    %129 = arith.mulf %127, %128 : vector<8x8xf32>
    %cst_44 = arith.constant dense<0xFF800000> : vector<8xf32>
    %130 = vector.multi_reduction <maximumf>, %129, %cst_44 [1] : vector<8x8xf32> to vector<8xf32>
    %131 = vector.shape_cast %130 : vector<8xf32> to vector<8x1xf32>
    %132 = vector.broadcast %131 : vector<8x1xf32> to vector<8x8xf32>
    %133 = arith.subf %129, %132 : vector<8x8xf32>
    %134 = math.exp %133 : vector<8x8xf32>
    %cst_45 = arith.constant dense<0.000000e+00> : vector<8xf32>
    %135 = vector.multi_reduction <add>, %134, %cst_45 [1] : vector<8x8xf32> to vector<8xf32>
    %136 = vector.shape_cast %135 : vector<8xf32> to vector<8x1xf32>
    %137 = vector.broadcast %136 : vector<8x1xf32> to vector<8x8xf32>
    %138 = arith.divf %134, %137 : vector<8x8xf32>
    %cst_46 = arith.constant dense<0.000000e+00> : vector<8x64xf32>
    %139 = tpu.matmul %138, %126, %cst_46 {dimension_numbers = #tpu.dot_dimension_numbers<[1], [0], [0], [1], [0, 0, 1, 1], [], []>} : vector<8x8xf32>, vector<8x64xf32>, vector<8x64xf32> -> vector<8x64xf32>
    %140 = vector.extract_strided_slice %9 {offsets = [0, 0], sizes = [8, 768], strides = [1, 1]} : vector<16x768xf32> to vector<8x768xf32>
    %141 = vector.extract_strided_slice %140 {offsets = [0, 0], sizes = [8, 64], strides = [1, 1]} : vector<8x768xf32> to vector<8x64xf32>
    %142 = vector.extract_strided_slice %140 {offsets = [0, 256], sizes = [8, 64], strides = [1, 1]} : vector<8x768xf32> to vector<8x64xf32>
    %143 = vector.extract_strided_slice %140 {offsets = [0, 512], sizes = [8, 64], strides = [1, 1]} : vector<8x768xf32> to vector<8x64xf32>
    %cst_47 = arith.constant dense<0.000000e+00> : vector<8x8xf32>
    %144 = tpu.matmul %141, %142, %cst_47 {dimension_numbers = #tpu.dot_dimension_numbers<[1], [1], [0], [0], [0, 0, 1, 0], [], []>} : vector<8x64xf32>, vector<8x64xf32>, vector<8x8xf32> -> vector<8x8xf32>
    %cst_48 = arith.constant 1.250000e-01 : f32
    %145 = vector.broadcast %cst_48 : f32 to vector<8x8xf32>
    %146 = arith.mulf %144, %145 : vector<8x8xf32>
    %cst_49 = arith.constant dense<0xFF800000> : vector<8xf32>
    %147 = vector.multi_reduction <maximumf>, %146, %cst_49 [1] : vector<8x8xf32> to vector<8xf32>
    %148 = vector.shape_cast %147 : vector<8xf32> to vector<8x1xf32>
    %149 = vector.broadcast %148 : vector<8x1xf32> to vector<8x8xf32>
    %150 = arith.subf %146, %149 : vector<8x8xf32>
    %151 = math.exp %150 : vector<8x8xf32>
    %cst_50 = arith.constant dense<0.000000e+00> : vector<8xf32>
    %152 = vector.multi_reduction <add>, %151, %cst_50 [1] : vector<8x8xf32> to vector<8xf32>
    %153 = vector.shape_cast %152 : vector<8xf32> to vector<8x1xf32>
    %154 = vector.broadcast %153 : vector<8x1xf32> to vector<8x8xf32>
    %155 = arith.divf %151, %154 : vector<8x8xf32>
    %cst_51 = arith.constant dense<0.000000e+00> : vector<8x64xf32>
    %156 = tpu.matmul %155, %143, %cst_51 {dimension_numbers = #tpu.dot_dimension_numbers<[1], [0], [0], [1], [0, 0, 1, 1], [], []>} : vector<8x8xf32>, vector<8x64xf32>, vector<8x64xf32> -> vector<8x64xf32>
    %157 = vector.extract_strided_slice %140 {offsets = [0, 64], sizes = [8, 64], strides = [1, 1]} : vector<8x768xf32> to vector<8x64xf32>
    %158 = vector.extract_strided_slice %140 {offsets = [0, 320], sizes = [8, 64], strides = [1, 1]} : vector<8x768xf32> to vector<8x64xf32>
    %159 = vector.extract_strided_slice %140 {offsets = [0, 576], sizes = [8, 64], strides = [1, 1]} : vector<8x768xf32> to vector<8x64xf32>
    %cst_52 = arith.constant dense<0.000000e+00> : vector<8x8xf32>
    %160 = tpu.matmul %157, %158, %cst_52 {dimension_numbers = #tpu.dot_dimension_numbers<[1], [1], [0], [0], [0, 0, 1, 0], [], []>} : vector<8x64xf32>, vector<8x64xf32>, vector<8x8xf32> -> vector<8x8xf32>
    %cst_53 = arith.constant 1.250000e-01 : f32
    %161 = vector.broadcast %cst_53 : f32 to vector<8x8xf32>
    %162 = arith.mulf %160, %161 : vector<8x8xf32>
    %cst_54 = arith.constant dense<0xFF800000> : vector<8xf32>
    %163 = vector.multi_reduction <maximumf>, %162, %cst_54 [1] : vector<8x8xf32> to vector<8xf32>
    %164 = vector.shape_cast %163 : vector<8xf32> to vector<8x1xf32>
    %165 = vector.broadcast %164 : vector<8x1xf32> to vector<8x8xf32>
    %166 = arith.subf %162, %165 : vector<8x8xf32>
    %167 = math.exp %166 : vector<8x8xf32>
    %cst_55 = arith.constant dense<0.000000e+00> : vector<8xf32>
    %168 = vector.multi_reduction <add>, %167, %cst_55 [1] : vector<8x8xf32> to vector<8xf32>
    %169 = vector.shape_cast %168 : vector<8xf32> to vector<8x1xf32>
    %170 = vector.broadcast %169 : vector<8x1xf32> to vector<8x8xf32>
    %171 = arith.divf %167, %170 : vector<8x8xf32>
    %cst_56 = arith.constant dense<0.000000e+00> : vector<8x64xf32>
    %172 = tpu.matmul %171, %159, %cst_56 {dimension_numbers = #tpu.dot_dimension_numbers<[1], [0], [0], [1], [0, 0, 1, 1], [], []>} : vector<8x8xf32>, vector<8x64xf32>, vector<8x64xf32> -> vector<8x64xf32>
    %173 = vector.extract_strided_slice %140 {offsets = [0, 128], sizes = [8, 64], strides = [1, 1]} : vector<8x768xf32> to vector<8x64xf32>
    %174 = vector.extract_strided_slice %140 {offsets = [0, 384], sizes = [8, 64], strides = [1, 1]} : vector<8x768xf32> to vector<8x64xf32>
    %175 = vector.extract_strided_slice %140 {offsets = [0, 640], sizes = [8, 64], strides = [1, 1]} : vector<8x768xf32> to vector<8x64xf32>
    %cst_57 = arith.constant dense<0.000000e+00> : vector<8x8xf32>
    %176 = tpu.matmul %173, %174, %cst_57 {dimension_numbers = #tpu.dot_dimension_numbers<[1], [1], [0], [0], [0, 0, 1, 0], [], []>} : vector<8x64xf32>, vector<8x64xf32>, vector<8x8xf32> -> vector<8x8xf32>
    %cst_58 = arith.constant 1.250000e-01 : f32
    %177 = vector.broadcast %cst_58 : f32 to vector<8x8xf32>
    %178 = arith.mulf %176, %177 : vector<8x8xf32>
    %cst_59 = arith.constant dense<0xFF800000> : vector<8xf32>
    %179 = vector.multi_reduction <maximumf>, %178, %cst_59 [1] : vector<8x8xf32> to vector<8xf32>
    %180 = vector.shape_cast %179 : vector<8xf32> to vector<8x1xf32>
    %181 = vector.broadcast %180 : vector<8x1xf32> to vector<8x8xf32>
    %182 = arith.subf %178, %181 : vector<8x8xf32>
    %183 = math.exp %182 : vector<8x8xf32>
    %cst_60 = arith.constant dense<0.000000e+00> : vector<8xf32>
    %184 = vector.multi_reduction <add>, %183, %cst_60 [1] : vector<8x8xf32> to vector<8xf32>
    %185 = vector.shape_cast %184 : vector<8xf32> to vector<8x1xf32>
    %186 = vector.broadcast %185 : vector<8x1xf32> to vector<8x8xf32>
    %187 = arith.divf %183, %186 : vector<8x8xf32>
    %cst_61 = arith.constant dense<0.000000e+00> : vector<8x64xf32>
    %188 = tpu.matmul %187, %175, %cst_61 {dimension_numbers = #tpu.dot_dimension_numbers<[1], [0], [0], [1], [0, 0, 1, 1], [], []>} : vector<8x8xf32>, vector<8x64xf32>, vector<8x64xf32> -> vector<8x64xf32>
    %189 = vector.extract_strided_slice %140 {offsets = [0, 192], sizes = [8, 64], strides = [1, 1]} : vector<8x768xf32> to vector<8x64xf32>
    %190 = vector.extract_strided_slice %140 {offsets = [0, 448], sizes = [8, 64], strides = [1, 1]} : vector<8x768xf32> to vector<8x64xf32>
    %191 = vector.extract_strided_slice %140 {offsets = [0, 704], sizes = [8, 64], strides = [1, 1]} : vector<8x768xf32> to vector<8x64xf32>
    %cst_62 = arith.constant dense<0.000000e+00> : vector<8x8xf32>
    %192 = tpu.matmul %189, %190, %cst_62 {dimension_numbers = #tpu.dot_dimension_numbers<[1], [1], [0], [0], [0, 0, 1, 0], [], []>} : vector<8x64xf32>, vector<8x64xf32>, vector<8x8xf32> -> vector<8x8xf32>
    %cst_63 = arith.constant 1.250000e-01 : f32
    %193 = vector.broadcast %cst_63 : f32 to vector<8x8xf32>
    %194 = arith.mulf %192, %193 : vector<8x8xf32>
    %cst_64 = arith.constant dense<0xFF800000> : vector<8xf32>
    %195 = vector.multi_reduction <maximumf>, %194, %cst_64 [1] : vector<8x8xf32> to vector<8xf32>
    %196 = vector.shape_cast %195 : vector<8xf32> to vector<8x1xf32>
    %197 = vector.broadcast %196 : vector<8x1xf32> to vector<8x8xf32>
    %198 = arith.subf %194, %197 : vector<8x8xf32>
    %199 = math.exp %198 : vector<8x8xf32>
    %cst_65 = arith.constant dense<0.000000e+00> : vector<8xf32>
    %200 = vector.multi_reduction <add>, %199, %cst_65 [1] : vector<8x8xf32> to vector<8xf32>
    %201 = vector.shape_cast %200 : vector<8xf32> to vector<8x1xf32>
    %202 = vector.broadcast %201 : vector<8x1xf32> to vector<8x8xf32>
    %203 = arith.divf %199, %202 : vector<8x8xf32>
    %cst_66 = arith.constant dense<0.000000e+00> : vector<8x64xf32>
    %204 = tpu.matmul %203, %191, %cst_66 {dimension_numbers = #tpu.dot_dimension_numbers<[1], [0], [0], [1], [0, 0, 1, 1], [], []>} : vector<8x8xf32>, vector<8x64xf32>, vector<8x64xf32> -> vector<8x64xf32>
    %205 = vector.extract_strided_slice %9 {offsets = [8, 0], sizes = [8, 768], strides = [1, 1]} : vector<16x768xf32> to vector<8x768xf32>
    %206 = vector.extract_strided_slice %205 {offsets = [0, 0], sizes = [8, 64], strides = [1, 1]} : vector<8x768xf32> to vector<8x64xf32>
    %207 = vector.extract_strided_slice %205 {offsets = [0, 256], sizes = [8, 64], strides = [1, 1]} : vector<8x768xf32> to vector<8x64xf32>
    %208 = vector.extract_strided_slice %205 {offsets = [0, 512], sizes = [8, 64], strides = [1, 1]} : vector<8x768xf32> to vector<8x64xf32>
    %cst_67 = arith.constant dense<0.000000e+00> : vector<8x8xf32>
    %209 = tpu.matmul %206, %207, %cst_67 {dimension_numbers = #tpu.dot_dimension_numbers<[1], [1], [0], [0], [0, 0, 1, 0], [], []>} : vector<8x64xf32>, vector<8x64xf32>, vector<8x8xf32> -> vector<8x8xf32>
    %cst_68 = arith.constant 1.250000e-01 : f32
    %210 = vector.broadcast %cst_68 : f32 to vector<8x8xf32>
    %211 = arith.mulf %209, %210 : vector<8x8xf32>
    %cst_69 = arith.constant dense<0xFF800000> : vector<8xf32>
    %212 = vector.multi_reduction <maximumf>, %211, %cst_69 [1] : vector<8x8xf32> to vector<8xf32>
    %213 = vector.shape_cast %212 : vector<8xf32> to vector<8x1xf32>
    %214 = vector.broadcast %213 : vector<8x1xf32> to vector<8x8xf32>
    %215 = arith.subf %211, %214 : vector<8x8xf32>
    %216 = math.exp %215 : vector<8x8xf32>
    %cst_70 = arith.constant dense<0.000000e+00> : vector<8xf32>
    %217 = vector.multi_reduction <add>, %216, %cst_70 [1] : vector<8x8xf32> to vector<8xf32>
    %218 = vector.shape_cast %217 : vector<8xf32> to vector<8x1xf32>
    %219 = vector.broadcast %218 : vector<8x1xf32> to vector<8x8xf32>
    %220 = arith.divf %216, %219 : vector<8x8xf32>
    %cst_71 = arith.constant dense<0.000000e+00> : vector<8x64xf32>
    %221 = tpu.matmul %220, %208, %cst_71 {dimension_numbers = #tpu.dot_dimension_numbers<[1], [0], [0], [1], [0, 0, 1, 1], [], []>} : vector<8x8xf32>, vector<8x64xf32>, vector<8x64xf32> -> vector<8x64xf32>
    %222 = vector.extract_strided_slice %205 {offsets = [0, 64], sizes = [8, 64], strides = [1, 1]} : vector<8x768xf32> to vector<8x64xf32>
    %223 = vector.extract_strided_slice %205 {offsets = [0, 320], sizes = [8, 64], strides = [1, 1]} : vector<8x768xf32> to vector<8x64xf32>
    %224 = vector.extract_strided_slice %205 {offsets = [0, 576], sizes = [8, 64], strides = [1, 1]} : vector<8x768xf32> to vector<8x64xf32>
    %cst_72 = arith.constant dense<0.000000e+00> : vector<8x8xf32>
    %225 = tpu.matmul %222, %223, %cst_72 {dimension_numbers = #tpu.dot_dimension_numbers<[1], [1], [0], [0], [0, 0, 1, 0], [], []>} : vector<8x64xf32>, vector<8x64xf32>, vector<8x8xf32> -> vector<8x8xf32>
    %cst_73 = arith.constant 1.250000e-01 : f32
    %226 = vector.broadcast %cst_73 : f32 to vector<8x8xf32>
    %227 = arith.mulf %225, %226 : vector<8x8xf32>
    %cst_74 = arith.constant dense<0xFF800000> : vector<8xf32>
    %228 = vector.multi_reduction <maximumf>, %227, %cst_74 [1] : vector<8x8xf32> to vector<8xf32>
    %229 = vector.shape_cast %228 : vector<8xf32> to vector<8x1xf32>
    %230 = vector.broadcast %229 : vector<8x1xf32> to vector<8x8xf32>
    %231 = arith.subf %227, %230 : vector<8x8xf32>
    %232 = math.exp %231 : vector<8x8xf32>
    %cst_75 = arith.constant dense<0.000000e+00> : vector<8xf32>
    %233 = vector.multi_reduction <add>, %232, %cst_75 [1] : vector<8x8xf32> to vector<8xf32>
    %234 = vector.shape_cast %233 : vector<8xf32> to vector<8x1xf32>
    %235 = vector.broadcast %234 : vector<8x1xf32> to vector<8x8xf32>
    %236 = arith.divf %232, %235 : vector<8x8xf32>
    %cst_76 = arith.constant dense<0.000000e+00> : vector<8x64xf32>
    %237 = tpu.matmul %236, %224, %cst_76 {dimension_numbers = #tpu.dot_dimension_numbers<[1], [0], [0], [1], [0, 0, 1, 1], [], []>} : vector<8x8xf32>, vector<8x64xf32>, vector<8x64xf32> -> vector<8x64xf32>
    %238 = vector.extract_strided_slice %205 {offsets = [0, 128], sizes = [8, 64], strides = [1, 1]} : vector<8x768xf32> to vector<8x64xf32>
    %239 = vector.extract_strided_slice %205 {offsets = [0, 384], sizes = [8, 64], strides = [1, 1]} : vector<8x768xf32> to vector<8x64xf32>
    %240 = vector.extract_strided_slice %205 {offsets = [0, 640], sizes = [8, 64], strides = [1, 1]} : vector<8x768xf32> to vector<8x64xf32>
    %cst_77 = arith.constant dense<0.000000e+00> : vector<8x8xf32>
    %241 = tpu.matmul %238, %239, %cst_77 {dimension_numbers = #tpu.dot_dimension_numbers<[1], [1], [0], [0], [0, 0, 1, 0], [], []>} : vector<8x64xf32>, vector<8x64xf32>, vector<8x8xf32> -> vector<8x8xf32>
    %cst_78 = arith.constant 1.250000e-01 : f32
    %242 = vector.broadcast %cst_78 : f32 to vector<8x8xf32>
    %243 = arith.mulf %241, %242 : vector<8x8xf32>
    %cst_79 = arith.constant dense<0xFF800000> : vector<8xf32>
    %244 = vector.multi_reduction <maximumf>, %243, %cst_79 [1] : vector<8x8xf32> to vector<8xf32>
    %245 = vector.shape_cast %244 : vector<8xf32> to vector<8x1xf32>
    %246 = vector.broadcast %245 : vector<8x1xf32> to vector<8x8xf32>
    %247 = arith.subf %243, %246 : vector<8x8xf32>
    %248 = math.exp %247 : vector<8x8xf32>
    %cst_80 = arith.constant dense<0.000000e+00> : vector<8xf32>
    %249 = vector.multi_reduction <add>, %248, %cst_80 [1] : vector<8x8xf32> to vector<8xf32>
    %250 = vector.shape_cast %249 : vector<8xf32> to vector<8x1xf32>
    %251 = vector.broadcast %250 : vector<8x1xf32> to vector<8x8xf32>
    %252 = arith.divf %248, %251 : vector<8x8xf32>
    %cst_81 = arith.constant dense<0.000000e+00> : vector<8x64xf32>
    %253 = tpu.matmul %252, %240, %cst_81 {dimension_numbers = #tpu.dot_dimension_numbers<[1], [0], [0], [1], [0, 0, 1, 1], [], []>} : vector<8x8xf32>, vector<8x64xf32>, vector<8x64xf32> -> vector<8x64xf32>
    %254 = vector.extract_strided_slice %205 {offsets = [0, 192], sizes = [8, 64], strides = [1, 1]} : vector<8x768xf32> to vector<8x64xf32>
    %255 = vector.extract_strided_slice %205 {offsets = [0, 448], sizes = [8, 64], strides = [1, 1]} : vector<8x768xf32> to vector<8x64xf32>
    %256 = vector.extract_strided_slice %205 {offsets = [0, 704], sizes = [8, 64], strides = [1, 1]} : vector<8x768xf32> to vector<8x64xf32>
    %cst_82 = arith.constant dense<0.000000e+00> : vector<8x8xf32>
    %257 = tpu.matmul %254, %255, %cst_82 {dimension_numbers = #tpu.dot_dimension_numbers<[1], [1], [0], [0], [0, 0, 1, 0], [], []>} : vector<8x64xf32>, vector<8x64xf32>, vector<8x8xf32> -> vector<8x8xf32>
    %cst_83 = arith.constant 1.250000e-01 : f32
    %258 = vector.broadcast %cst_83 : f32 to vector<8x8xf32>
    %259 = arith.mulf %257, %258 : vector<8x8xf32>
    %cst_84 = arith.constant dense<0xFF800000> : vector<8xf32>
    %260 = vector.multi_reduction <maximumf>, %259, %cst_84 [1] : vector<8x8xf32> to vector<8xf32>
    %261 = vector.shape_cast %260 : vector<8xf32> to vector<8x1xf32>
    %262 = vector.broadcast %261 : vector<8x1xf32> to vector<8x8xf32>
    %263 = arith.subf %259, %262 : vector<8x8xf32>
    %264 = math.exp %263 : vector<8x8xf32>
    %cst_85 = arith.constant dense<0.000000e+00> : vector<8xf32>
    %265 = vector.multi_reduction <add>, %264, %cst_85 [1] : vector<8x8xf32> to vector<8xf32>
    %266 = vector.shape_cast %265 : vector<8xf32> to vector<8x1xf32>
    %267 = vector.broadcast %266 : vector<8x1xf32> to vector<8x8xf32>
    %268 = arith.divf %264, %267 : vector<8x8xf32>
    %cst_86 = arith.constant dense<0.000000e+00> : vector<8x64xf32>
    %269 = tpu.matmul %268, %256, %cst_86 {dimension_numbers = #tpu.dot_dimension_numbers<[1], [0], [0], [1], [0, 0, 1, 1], [], []>} : vector<8x8xf32>, vector<8x64xf32>, vector<8x64xf32> -> vector<8x64xf32>
    %cst_87 = arith.constant dense<0.000000e+00> : vector<8x8xf32>
    %270 = tpu.matmul %156, %26, %cst_87 {dimension_numbers = #tpu.dot_dimension_numbers<[1], [1], [0], [0], [0, 0, 1, 0], [], []>} : vector<8x64xf32>, vector<8x64xf32>, vector<8x8xf32> -> vector<8x8xf32>
    %cst_88 = arith.constant 1.250000e-01 : f32
    %271 = vector.broadcast %cst_88 : f32 to vector<8x8xf32>
    %272 = arith.mulf %270, %271 : vector<8x8xf32>
    %cst_89 = arith.constant dense<0.000000e+00> : vector<8x8xf32>
    %273 = tpu.matmul %172, %42, %cst_89 {dimension_numbers = #tpu.dot_dimension_numbers<[1], [1], [0], [0], [0, 0, 1, 0], [], []>} : vector<8x64xf32>, vector<8x64xf32>, vector<8x8xf32> -> vector<8x8xf32>
    %cst_90 = arith.constant 1.250000e-01 : f32
    %274 = vector.broadcast %cst_90 : f32 to vector<8x8xf32>
    %275 = arith.mulf %273, %274 : vector<8x8xf32>
    %cst_91 = arith.constant dense<0.000000e+00> : vector<8x8xf32>
    %276 = tpu.matmul %188, %58, %cst_91 {dimension_numbers = #tpu.dot_dimension_numbers<[1], [1], [0], [0], [0, 0, 1, 0], [], []>} : vector<8x64xf32>, vector<8x64xf32>, vector<8x8xf32> -> vector<8x8xf32>
    %cst_92 = arith.constant 1.250000e-01 : f32
    %277 = vector.broadcast %cst_92 : f32 to vector<8x8xf32>
    %278 = arith.mulf %276, %277 : vector<8x8xf32>
    %cst_93 = arith.constant dense<0.000000e+00> : vector<8x8xf32>
    %279 = tpu.matmul %204, %74, %cst_93 {dimension_numbers = #tpu.dot_dimension_numbers<[1], [1], [0], [0], [0, 0, 1, 0], [], []>} : vector<8x64xf32>, vector<8x64xf32>, vector<8x8xf32> -> vector<8x8xf32>
    %cst_94 = arith.constant 1.250000e-01 : f32
    %280 = vector.broadcast %cst_94 : f32 to vector<8x8xf32>
    %281 = arith.mulf %279, %280 : vector<8x8xf32>
    %282 = tpu.concatenate %272, %275, %278, %281 in 1 : vector<8x8xf32>, vector<8x8xf32>, vector<8x8xf32>, vector<8x8xf32> -> vector<8x32xf32>
    %c0_95 = arith.constant 0 : index
    %c0_96 = arith.constant 0 : index
    %c0_97 = arith.constant 0 : index
    %283 = vector.load %arg5[%c0_95, %c0_96, %c0_97] : memref<2x8x32xf32, #tpu.memory_space<vmem>>, vector<1x8x32xf32>
    %284 = vector.shape_cast %283 : vector<1x8x32xf32> to vector<8x32xf32>
    %285 = vector.shape_cast %282 : vector<8x32xf32> to vector<1x8x32xf32>
    tpu.vector_store %arg5[%c0_95, %c0_96, %c0_97], %285 {strides = array<i32>} : memref<2x8x32xf32, #tpu.memory_space<vmem>>, vector<1x8x32xf32>,
    %cst_98 = arith.constant dense<0.000000e+00> : vector<8x8xf32>
    %286 = tpu.matmul %221, %91, %cst_98 {dimension_numbers = #tpu.dot_dimension_numbers<[1], [1], [0], [0], [0, 0, 1, 0], [], []>} : vector<8x64xf32>, vector<8x64xf32>, vector<8x8xf32> -> vector<8x8xf32>
    %cst_99 = arith.constant 1.250000e-01 : f32
    %287 = vector.broadcast %cst_99 : f32 to vector<8x8xf32>
    %288 = arith.mulf %286, %287 : vector<8x8xf32>
    %cst_100 = arith.constant dense<0.000000e+00> : vector<8x8xf32>
    %289 = tpu.matmul %237, %107, %cst_100 {dimension_numbers = #tpu.dot_dimension_numbers<[1], [1], [0], [0], [0, 0, 1, 0], [], []>} : vector<8x64xf32>, vector<8x64xf32>, vector<8x8xf32> -> vector<8x8xf32>
    %cst_101 = arith.constant 1.250000e-01 : f32
    %290 = vector.broadcast %cst_101 : f32 to vector<8x8xf32>
    %291 = arith.mulf %289, %290 : vector<8x8xf32>
    %cst_102 = arith.constant dense<0.000000e+00> : vector<8x8xf32>
    %292 = tpu.matmul %253, %123, %cst_102 {dimension_numbers = #tpu.dot_dimension_numbers<[1], [1], [0], [0], [0, 0, 1, 0], [], []>} : vector<8x64xf32>, vector<8x64xf32>, vector<8x8xf32> -> vector<8x8xf32>
    %cst_103 = arith.constant 1.250000e-01 : f32
    %293 = vector.broadcast %cst_103 : f32 to vector<8x8xf32>
    %294 = arith.mulf %292, %293 : vector<8x8xf32>
    %cst_104 = arith.constant dense<0.000000e+00> : vector<8x8xf32>
    %295 = tpu.matmul %269, %139, %cst_104 {dimension_numbers = #tpu.dot_dimension_numbers<[1], [1], [0], [0], [0, 0, 1, 0], [], []>} : vector<8x64xf32>, vector<8x64xf32>, vector<8x8xf32> -> vector<8x8xf32>
    %cst_105 = arith.constant 1.250000e-01 : f32
    %296 = vector.broadcast %cst_105 : f32 to vector<8x8xf32>
    %297 = arith.mulf %295, %296 : vector<8x8xf32>
    %298 = tpu.concatenate %288, %291, %294, %297 in 1 : vector<8x8xf32>, vector<8x8xf32>, vector<8x8xf32>, vector<8x8xf32> -> vector<8x32xf32>
    %c1 = arith.constant 1 : index
    %c0_106 = arith.constant 0 : index
    %c0_107 = arith.constant 0 : index
    %299 = vector.load %arg5[%c1, %c0_106, %c0_107] : memref<2x8x32xf32, #tpu.memory_space<vmem>>, vector<1x8x32xf32>
    %300 = vector.shape_cast %299 : vector<1x8x32xf32> to vector<8x32xf32>
    %301 = vector.shape_cast %298 : vector<8x32xf32> to vector<1x8x32xf32>
    tpu.vector_store %arg5[%c1, %c0_106, %c0_107], %301 {strides = array<i32>} : memref<2x8x32xf32, #tpu.memory_space<vmem>>, vector<1x8x32xf32>,
    return
  }
  func.func @transform_0(%arg0: i32) -> (i32, i32) {
    %c0_i32 = arith.constant 0 : i32
    %c0_i32_0 = arith.constant 0 : i32
    %c0_i32_1 = arith.constant 0 : i32
    return %c0_i32, %c0_i32_0 : i32, i32
  }
  func.func @transform_1(%arg0: i32) -> (i32, i32) {
    %c0_i32 = arith.constant 0 : i32
    %c0_i32_0 = arith.constant 0 : i32
    %c0_i32_1 = arith.constant 0 : i32
    return %c0_i32, %c0_i32_0 : i32, i32
  }
  func.func @transform_2(%arg0: i32) -> (i32, i32) {
    %c0_i32 = arith.constant 0 : i32
    %c0_i32_0 = arith.constant 0 : i32
    %c0_i32_1 = arith.constant 0 : i32
    return %c0_i32, %c0_i32_0 : i32, i32
  }
  func.func @transform_3(%arg0: i32) -> (i32, i32) {
    %c0_i32 = arith.constant 0 : i32
    %c0_i32_0 = arith.constant 0 : i32
    %c0_i32_1 = arith.constant 0 : i32
    return %c0_i32, %c0_i32_0 : i32, i32
  }
  func.func @transform_4(%arg0: i32) -> (i32, i32, i32) {
    %c0_i32 = arith.constant 0 : i32
    %c0_i32_0 = arith.constant 0 : i32
    %c0_i32_1 = arith.constant 0 : i32
    %c0_i32_2 = arith.constant 0 : i32
    return %c0_i32, %c0_i32_0, %c0_i32_1 : i32, i32, i32
  }
}

</mosaic_0001>

<bundles_post_ra>
// kernel: multihead_attention.1
= control target key start
LH: loop header
LB: loop body
LE: loop exit
PB: predicated region body
PF: predicated region fallthrough
CT: control target
= control target key end

     0   :  { %9 = vsyncpa [#allocation3], 0  ;;  %s4774_s0 = inlined_call_operand.hbm [shape: f32[16,32], index: 0, kind: input, shape index: {}]   ;;  %s4775_s1 = inlined_call_operand.hbm [shape: f32[16,32], index: 1, kind: input, shape index: {}]   ;;  %s4776_s2 = inlined_call_operand.hbm [shape: f32[32,768], index: 2, kind: input, shape index: {}]   ;;  %s4777_s3 = inlined_call_operand.vmem [shape: f32[1,768], index: 3, kind: input, shape index: {}]   ;;  %s4778_s4 = inlined_call_operand.hbm [shape: f32[2,8,32], index: 4, kind: output, shape index: {}]  }
   0x1   :  { %10 = vsyncpa [#allocation6], 0 }
   0x2   :  { %11 = vsyncpa [#allocation4], 0  ;;  %s4213_s15 = smov [#allocation5]   ;;  %s4214_s17 = smov [#allocation2]  }
   0x3   :  { %s29_s16 = sshll.u32 %s4213_s15, 4  ;;  %s17_s18 = sshll.u32 %s4214_s17, 4  ;;  %s30_s16 = int_to_ptr.vmem [resolvable:$true] %s29_s16  ;;  %s18_s18 = int_to_ptr.vmem [resolvable:$true] %s17_s18 }
   0x4   :  { %s4135_s19 = scalar_lea.vmem %s30_s16, 256  ;;  %p4140_p1 = scmp.lt.s32.totalorder %s30_s16, %s30_s16 }
   0x5   :  { %p4136_p0 = scmp.ne.s32.totalorder %s30_s16, %s4135_s19  ;;  %p4141_p2 = scmp.lt.s32.totalorder %s4135_s19, %s4135_s19 }
   0x7   :  { %p4142_p3 = por %p4141_p2, %p4140_p1 }
   0x9   :  { %p4143_p4 = pnand %p4142_p3, %p4136_p0 }
   0xb   :  { %4146 = shalt.err (!%p4143_p4)
}
   0xc   :  { %s4215_s20 = smov 128   ;;  %s4216_s21 = smov 8  }
   0xd   :  { %35 = dma.hbm_to_vmem [thread:$0]  %s4775_s1, 256, %s30_s16, [#allocation6], %s4215_s20, %s4215_s20, %s4216_s21  }
   0xe   :  { %s4155_s24 = scalar_lea.vmem %s18_s18, 256  ;;  %p4160_p6 = scmp.lt.s32.totalorder %s18_s18, %s18_s18 }
   0xf   :  { %p4156_p5 = scmp.ne.s32.totalorder %s18_s18, %s4155_s24  ;;  %p4161_p7 = scmp.lt.s32.totalorder %s4155_s24, %s4155_s24 }
  0x11   :  { %p4162_p8 = por %p4161_p7, %p4160_p6 }
  0x13   :  { %p4163_p9 = pnand %p4162_p8, %p4156_p5 }
  0x15   :  { %4166 = shalt.err (!%p4163_p9)
}
  0x16   :  { %23 = dma.hbm_to_vmem [thread:$0]  %s4774_s0, 256, %s18_s18, [#allocation3], %s4215_s20, %s4215_s20, %s4216_s21  }
  0x17   :  { %s4217_s27 = smov [#allocation7]  }
  0x18   :  { %s41_s28 = sshll.u32 %s4217_s27, 4  ;;  %s42_s28 = int_to_ptr.vmem [resolvable:$true] %s41_s28 }
  0x19   :  { %s4175_s29 = scalar_lea.vmem %s42_s28, 3072  ;;  %p4180_p11 = scmp.lt.s32.totalorder %s42_s28, %s42_s28 }
  0x1a   :  { %p4176_p10 = scmp.ne.s32.totalorder %s42_s28, %s4175_s29  ;;  %p4181_p12 = scmp.lt.s32.totalorder %s4175_s29, %s4175_s29 }
  0x1c   :  { %p4182_p13 = por %p4181_p12, %p4180_p11 }
  0x1e   :  { %p4183_p0 = pnand %p4182_p13, %p4176_p10 }
  0x20   :  { %4186 = shalt.err (!%p4183_p0)
}
  0x21   :  { %s4218_s1 = smov 768   ;;  %s4219_s30 = smov 48  }
  0x22   :  { %47 = dma.hbm_to_vmem [thread:$0]  %s4776_s2, 3072, %s42_s28, [#allocation6], %s4218_s1, %s4218_s1, %s4219_s30  }
  0x23   :  { %4207 = dma.done.wait [#allocation3], 256  }
  0x24   :  { %4208 = vsyncadd [#allocation3], 4294967040 }
  0x25   :  { %4209 = dma.done.wait [#allocation6], 3328  }
  0x26   :  { %4210 = vsyncadd [#allocation6], 4294963968  ;;  %v4220_v0 = vmov 0.0   ;;  %v84_v1 = vld [vmem:[#allocation7 + $0xa8] sm:$0xff]  ;;  %v83_v2 = vld [vmem:[#allocation7 + $0xa0] sm:$0xff]  ;;  %vm119_vm0 = vcmask 261120   ;;  %v89_v29 = vlaneseq }
  0x27   :  { %285 = vmatprep.mubr.f32.mxu1 %v4220_v0  ;;  %196 = vmatprep.mubr.f32.mxu0 %v4220_v0  ;;  %v78_v3 = vld [vmem:[#allocation7 + $0x78] sm:$0xff]  ;;  %v77_v5 = vld [vmem:[#allocation7 + $0x70] sm:$0xff]  ;;  %v72_v7 = vld [vmem:[#allocation7 + $0x48] sm:$0xff]  ;;  %vm4221_vm1 = vmmov 0   ;;  %vm399_vm2 = vcmask 523264   ;;  %vm477_vm3 = vcmask 64512  }
  0x28   :  { %245 = vmatprep.subr.mxu1 %v84_v1  ;;  %v82_v4 = vld [vmem:[#allocation7 + $0x98] sm:$0xff]  ;;  %v81_v6 = vld [vmem:[#allocation7 + $0x90] sm:$0xff]  ;;  %v76_v8 = vld [vmem:[#allocation7 + $0x68] sm:$0xff]  ;;  %v90_v30 = vshrl.u32 %v89_v29, 7  ;;  %s4223_s7 = smov 16   ;;  %s4224_s8 = smov 24  }
  0x29   :  { %246 = vmatpush1.msra.mxu1 %v83_v2  ;;  %156 = vmatprep.subr.mxu0 %v82_v4  ;;  %v71_v9 = vld [vmem:[#allocation7 + $0x40] sm:$0xff]  ;;  %v70_v11 = vld [vmem:[#allocation7 + $0x38] sm:$0xff]  ;;  %v69_v13 = vld [vmem:[#allocation7 + $0x30] sm:$0xff]  ;;  %vm3346_vm4 = vcmask 130048   ;;  %vm3348_vm5 = vcmask 195584   ;;  %s4225_s9 = smov [#allocation8]  }
  0x2a   :  { %247 = vmatprep.subr.mxu1 %v78_v3  ;;  %157 = vmatpush1.msra.mxu0 %v81_v6  ;;  %v75_v10 = vld [vmem:[#allocation7 + $0x60] sm:$0xff]  ;;  %v66_v12 = vld [vmem:[#allocation7 + $0x18] sm:$0xff]  ;;  %v65_v14 = vld [vmem:[#allocation7 + $0x10] sm:$0xff]  ;;  %v99_v31 = vsub.s32 2, %v90_v30  ;;  %v91_v33 = vsub.s32 0, %v90_v30  ;;  %v103_v34 = vsub.s32 3, %v90_v30 }
  0x2b   :  { %248 = vmatpush1.msra.mxu1 %v77_v5  ;;  %158 = vmatprep.subr.mxu0 %v76_v8  ;;  %v64_v15 = vld [vmem:[#allocation7 + $0x8] sm:$0xff]  ;;  %v59_v16 = vld [vmem:[#allocation2] sm:$0xff]  ;;  %v86_v18 = vld [vmem:[#allocation7 + $0xb8] sm:$0xff]  ;;  %v95_v37 = vsub.s32 1, %v90_v30  ;;  %v107_v53 = vsub.s32 4, %v90_v30  ;;  %v111_v3 = vsub.s32 5, %v90_v30 }
  0x2c   :  { %249 = vmatprep.subr.mxu1 %v72_v7  ;;  %159 = vmatpush1.msra.mxu0 %v75_v10  ;;  %v63_v17 = vld [vmem:[#allocation7] sm:$0xff]  ;;  %v85_v19 = vld [vmem:[#allocation7 + $0xb0] sm:$0xff]  ;;  %v60_v20 = vld [vmem:[#allocation2 + $0x8] sm:$0xff]  ;;  %s3681_s10 = sshll.u32 %s4225_s9, 4  ;;  %s3682_s10 = int_to_ptr.vmem [resolvable:$true] %s3681_s10 }
  0x2d   :  { %250 = vmatpush1.msra.mxu1 %v71_v9  ;;  %160 = vmatprep.subr.mxu0 %v70_v11  ;;  %v80_v21 = vld [vmem:[#allocation7 + $0x88] sm:$0xff]  ;;  %v79_v22 = vld [vmem:[#allocation7 + $0x80] sm:$0xff]  ;;  %v74_v23 = vld [vmem:[#allocation7 + $0x58] sm:$0xff]  ;;  %s4187_s11 = scalar_lea.vmem %s3682_s10, 256  ;;  %p4192_p2 = scmp.lt.s32.totalorder %s3682_s10, %s3682_s10 }
  0x2e   :  { %251 = vmatprep.subr.mxu1 %v66_v12  ;;  %161 = vmatpush1.msra.mxu0 %v69_v13  ;;  %v73_v24 = vld [vmem:[#allocation7 + $0x50] sm:$0xff]  ;;  %v68_v26 = vld [vmem:[#allocation7 + $0x28] sm:$0xff]  ;;  %v67_v27 = vld [vmem:[#allocation7 + $0x20] sm:$0xff]  ;;  %p4188_p1 = scmp.ne.s32.totalorder %s3682_s10, %s4187_s11  ;;  %p4193_p3 = scmp.lt.s32.totalorder %s4187_s11, %s4187_s11 }
  0x2f   :  { %252 = vmatpush1.msra.mxu1 %v65_v14  ;;  %162 = vmatprep.subr.mxu0 %v64_v15  ;;  %v61_v25 = vld [vmem:[#allocation5] sm:$0xff]  ;;  %v62_v28 = vld [vmem:[#allocation5 + $0x8] sm:$0xff]  ;;  %v87_v32 = vld [vmem:[%s4777_s3] sm:$0x3f]  ;;  %s4222_s3 = smov 64  }
  0x30   :  { %3698 = vmatmul.mubr.msk.f32.vlgmr.msra.gmra.mxu1 %vm119_vm0, %v59_v16  ;;  %163 = vmatpush1.msra.mxu0 %v63_v17  ;;  %v4299_v35 = vrot.slane %v87_v32, %v99_v31  ;;  %v92_v36 = vrot.slane %v87_v32, %v91_v33  ;;  %v4301_v38 = vrot.slane %v87_v32, %v103_v34  ;;  %p4194_p4 = por %p4193_p3, %p4192_p2 }
  0x31   :  { %3694 = vmatmul.mubr.msk.f32.vlgmr.msra.gmra.mxu0 %vm119_vm0, %v59_v16  ;;  %291 = vmatprep.mubr.f32.mxu1 %v4220_v0  ;;  %v96_v44 = vrot.slane %v87_v32, %v95_v37  ;;  %v108_v59 = vrot.slane %v87_v32, %v107_v53  ;;  %v4347_v7 = vrot.slane %v87_v32, %v111_v3 }
  0x32   :  { %202 = vmatprep.mubr.f32.mxu0 %v4220_v0  ;;  %334 = vmatprep.subr.mxu0 %v86_v18  ;;  %p4195_p5 = pnand %p4194_p4, %p4188_p1 }
  0x33   :  { %335 = vmatpush1.msra.mxu0 %v85_v19  ;;  %3850 = vmatprep.subr.mxu1 %v4220_v0 }
  0x34   :  { %3699 = vmatmul.mubr.msk.f32.gmra.mxu1 %vm119_vm0, %v60_v20  ;;  %336 = vmatprep.subr.mxu0 %v80_v21 }
  0x35   :  { %3695 = vmatmul.mubr.msk.f32.gmra.mxu0 %vm119_vm0, %v60_v20  ;;  %297 = vmatprep.mubr.f32.mxu1 %v4220_v0 }
  0x36   :  { %208 = vmatprep.mubr.f32.mxu0 %v4220_v0  ;;  %337 = vmatpush1.msra.mxu0 %v79_v22 }
  0x37   :  { %338 = vmatprep.subr.mxu0 %v74_v23 }
  0x38   :  { %339 = vmatpush1.msra.mxu0 %v73_v24  ;;  %3700 = vmatmul.mubr.msk.f32.gmra.mxu1 %vm119_vm0, %v61_v25 }
  0x39   :  { %3696 = vmatmul.mubr.msk.f32.gmra.mxu0 %vm119_vm0, %v61_v25  ;;  %340 = vmatprep.subr.mxu0 %v68_v26 }
  0x3a   :  { %214 = vmatprep.mubr.f32.mxu0 %v4220_v0  ;;  %341 = vmatpush1.msra.mxu0 %v67_v27 }
  0x3b   :  { %303 = vmatprep.mubr.f32.mxu1 %v4220_v0  ;;  %3870 = vmatprep.subr.mxu0 %v4220_v0 }
  0x3c   :  { %3701 = vmatmul.mubr.msk.f32.gmra.mxu1 %vm119_vm0, %v62_v28 }
  0x3d   :  { %3697 = vmatmul.mubr.msk.f32.gmra.mxu0 %vm119_vm0, %v62_v28  ;;  %3852 = vmatprep.mubr.msk.f32.mxu1 %vm4221_vm1, %v4220_v0 }
  0x3e   :  { %374 = vmatprep.mubr.f32.mxu0 %v4220_v0 }
  0x41   :  { %3702 = vmatmul.mubr.msk.f32.vlgmr.msra.gmra.mxu0 %vm119_vm0, %v59_v16 }
  0x42   :  { %380 = vmatprep.mubr.f32.mxu0 %v4220_v0 }
  0x45   :  { %3703 = vmatmul.mubr.msk.f32.gmra.mxu0 %vm119_vm0, %v60_v20 }
  0x46   :  { %386 = vmatprep.mubr.f32.mxu0 %v4220_v0 }
  0x49   :  { %3704 = vmatmul.mubr.msk.f32.gmra.mxu0 %vm119_vm0, %v61_v25 }
  0x4a   :  { %392 = vmatprep.mubr.f32.mxu0 %v4220_v0 }
  0x4d   :  { %3705 = vmatmul.mubr.msk.f32.gmra.mxu0 %vm119_vm0, %v62_v28 }
  0x4e   :  { %3872 = vmatprep.mubr.msk.f32.mxu0 %vm4221_vm1, %v4220_v0 }
  0xf0   :  { %v287_v39 = vpop.f32.mrf.mxu1 }
  0xf1   :  { %v288_v40 = vadd.f32 %v287_v39, %v4299_v35  ;;  %v198_v41 = vpop.f32.mrf.mxu0 }
  0xf2   :  { %v289_v42 = vpop.f32.mrf.mxu1  ;;  %v199_v43 = vadd.f32 %v198_v41, %v92_v36 }
  0xf3   :  { %v4305_v45 = vadd.f32 %v289_v42, %v4301_v38  ;;  %564 = vrot.lane.b32.xlu1 %v288_v40, %s4222_s3  ;;  %3851 = vmatpush3.xpose.msk.msra.mxu1 %vm399_vm2, %v288_v40  ;;  %v200_v46 = vpop.f32.mrf.mxu0 }
  0xf4   :  { %3855 = vmatprep.subr.mxu1 %v4220_v0  ;;  %v201_v48 = vadd.f32 %v200_v46, %v96_v44  ;;  %v293_v50 = vpop.f32.mrf.mxu1 }
  0xf5   :  { %3871 = vmatpush3.xpose.msk.msra.mxu0 %vm399_vm2, %v4305_v45  ;;  %v204_v47 = vpop.f32.mrf.mxu0  ;;  %v4324_v54 = vadd.f32 %v293_v50, %v4299_v35 }
  0xf6   :  { %3853 = vmatmul.mubr.msk.f32.vlgmr.msra.gmra.mxu1 %vm399_vm2, %v199_v43  ;;  %3880 = vmatprep.subr.mxu0 %v4220_v0  ;;  %v4330_v60 = vadd.f32 %v204_v47, %v92_v36  ;;  %v295_v62 = vpop.f32.mrf.mxu1 }
  0xf7   :  { %562 = vrot.lane.b32.xlu1 %v199_v43, %s4222_s3  ;;  %v206_v49 = vpop.f32.mrf.mxu0  ;;  %3857 = vmatprep.mubr.msk.f32.mxu1 %vm4221_vm1, %v4220_v0  ;;  %v4341_v4 = vadd.f32 %v295_v62, %v4301_v38 }
  0xf8   :  { %3873 = vmatmul.mubr.msk.f32.vlgmr.msra.gmra.mxu0 %vm399_vm2, %v201_v48  ;;  %v4351_v9 = vadd.f32 %v206_v49, %v96_v44  ;;  %v299_v11 = vpop.f32.mrf.mxu1 }
  0xf9   :  { %v210_v51 = vpop.f32.mrf.mxu0  ;;  %3882 = vmatprep.mubr.msk.f32.mxu0 %vm4221_vm1, %v4220_v0  ;;  %v4361_v15 = vadd.f32 %v299_v11, %v4299_v35 }
  0xfa   :  { %v4320_v52 = vadd.f32 %v210_v51, %v92_v36  ;;  %v301_v16 = vpop.f32.mrf.mxu1 }
  0xfb   :  { %890 = vrot.lane.b32.xlu1 %v201_v48, %s4222_s3  ;;  %v212_v55 = vpop.f32.mrf.mxu0  ;;  %v4366_v17 = vadd.f32 %v301_v16, %v4301_v38 }
  0xfc   :  { %v4326_v56 = vadd.f32 %v212_v55, %v96_v44  ;;  %v305_v18 = vpop.f32.mrf.mxu1 }
  0xfd   :  { %v216_v57 = vpop.f32.mrf.mxu0  ;;  %v4371_v19 = vadd.f32 %v305_v18, %v4299_v35 }
  0xfe   :  { %v4328_v58 = vadd.f32 %v216_v57, %v92_v36  ;;  %v307_v20 = vpop.f32.mrf.mxu1 }
  0xff   :  { %1220 = vrot.lane.b32.xlu1 %v4324_v54, %s4222_s3  ;;  %v218_v61 = vpop.f32.mrf.mxu0  ;;  %v4376_v21 = vadd.f32 %v307_v20, %v4301_v38 }
 0x100   :  { %v4334_v63 = vadd.f32 %v218_v61, %v96_v44 }
 0x101   :  { %v376_v1 = vpop.f32.mrf.mxu0 }
 0x102   :  { %v4336_v2 = vadd.f32 %v376_v1, %v108_v59 }
 0x103   :  { %1218 = vrot.lane.b32.xlu1 %v4330_v60, %s4222_s3  ;;  %v4343_v5 = vpop.f32.mrf.mxu0 }
 0x104   :  { %3856 = vmatpush3.msra.mxu1 %v4336_v2 }
 0x105   :  { %v382_v6 = vpop.f32.mrf.mxu0  ;;  %3860 = vmatprep.subr.mxu1 %v4220_v0 }
 0x106   :  { %v4349_v8 = vadd.f32 %v382_v6, %v108_v59 }
 0x107   :  { %1548 = vrot.lane.b32.xlu1 %v4341_v4, %s4222_s3  ;;  %v384_v10 = vpop.f32.mrf.mxu0 }
 0x108   :  { %v4356_v12 = vadd.f32 %v384_v10, %v4347_v7 }
 0x109   :  { %v388_v13 = vpop.f32.mrf.mxu0 }
 0x10a   :  { %v4358_v14 = vadd.f32 %v388_v13, %v108_v59 }
 0x10b   :  { %1546 = vrot.lane.b32.xlu1 %v4351_v9, %s4222_s3  ;;  %v390_v22 = vpop.f32.mrf.mxu0 }
 0x10c   :  { %v4383_v24 = vadd.f32 %v390_v22, %v4347_v7 }
 0x10d   :  { %v394_v23 = vpop.f32.mrf.mxu0 }
 0x10e   :  { %v4385_v25 = vadd.f32 %v394_v23, %v108_v59 }
 0x10f   :  { %1876 = vrot.lane.b32.xlu1 %v4361_v15, %s4222_s3  ;;  %v4387_v26 = vpop.f32.mrf.mxu0 }
 0x113   :  { %2204 = vrot.lane.b32.xlu1 %v4366_v17, %s4222_s3 }
 0x117   :  { %2532 = vrot.lane.b32.xlu1 %v4371_v19, %s4222_s3 }
 0x11b   :  { %2860 = vrot.lane.b32.xlu1 %v4376_v21, %s4222_s3 }
 0x165   :  { %v565_v40 = vpop.permute.xlu1 %564 }
 0x169   :  { %v563_v41 = vpop.permute.xlu1 %562 }
 0x16d   :  { %v891_v42 = vpop.permute.xlu1 %890 }
 0x171   :  { %v1221_v44 = vpop.permute.xlu1 %1220 }
 0x175   :  { %v1219_v46 = vpop.permute.xlu1 %1218 }
 0x179   :  { %v1549_v49 = vpop.permute.xlu1 %1548 }
 0x17d   :  { %v1547_v50 = vpop.permute.xlu1 %1546 }
 0x181   :  { %v1877_v51 = vpop.permute.xlu1 %1876 }
 0x1b6   :  { %v472_v27 = vpop.f32.mrf.mxu1 }
 0x1b7   :  { %v476_v28 = vmul.f32 0.125, %v472_v27 }
 0x1b8   :  { %v801_v29 = vpop.f32.mrf.mxu0  ;;  %v3854_v30 = vpop.f32.mrf.mxu1 }
 0x1b9   :  { %v478_v31 = vsel %vm477_vm3, %v476_v28, -inf  ;;  %v4401_v38 = vmul.f32 0.125, %v801_v29 }
 0x1ba   :  { %479 = vmax.xlane.f32.xlu0 %v478_v31  ;;  %v3874_v32 = vpop.f32.mrf.mxu0 }
 0x1bb   :  { %v806_v39 = vsel %vm477_vm3, %v4401_v38, -inf }
 0x243   :  { %v480_v33 = vpop.xlane.xlu0 %479 }
 0x244   :  { %v481_v34 = vsub.f32 %v476_v28, %v480_v33 }
 0x246   :  { %v482_v35 = vmul.f32 1.442695, %v481_v34 }
 0x248   :  { %4063 = vpow2.f32 %v482_v35 }
 0x255   :  { %v4064_v36 = vpop.eup %4063 }
 0x256   :  { %v484_v37 = vsel %vm477_vm3, %v4064_v36, 0.0 }
 0x257   :  { %485 = vadd.xlane.f32.xlu0 %v484_v37 }
 0x26d   :  { %892 = vrot.lane.b32.xlu0 %v4305_v45, %s4222_s3 }
 0x271   :  { %1874 = vrot.lane.b32.xlu0 %v4320_v52, %s4222_s3 }
 0x275   :  { %2202 = vrot.lane.b32.xlu0 %v4326_v56, %s4222_s3 }
 0x279   :  { %2530 = vrot.lane.b32.xlu0 %v4328_v58, %s4222_s3 }
 0x27d   :  { %2858 = vrot.lane.b32.xlu0 %v4334_v63, %s4222_s3 }
 0x29c   :  { %807 = vmax.xlane.f32.xlu0 %v806_v39 }
 0x2e0   :  { %v486_v43 = vpop.xlane.xlu0 %485 }
 0x2e1   :  { %4065 = vrcp.f32 %v486_v43 }
 0x2e4   :  { %v893_v45 = vpop.permute.xlu0 %892 }
 0x2e5   :  { %3881 = vmatpush3.xpose.msk.msra.mxu0 %vm399_vm2, %v893_v45 }
 0x2e6   :  { %3890 = vmatprep.subr.mxu0 %v4220_v0 }
 0x2e8   :  { %3883 = vmatmul.mubr.msk.f32.vlgmr.msra.gmra.mxu0 %vm399_vm2, %v891_v42  ;;  %v1875_v53 = vpop.permute.xlu0 %1874 }
 0x2e9   :  { %3891 = vmatpush3.xpose.msk.msra.mxu0 %vm399_vm2, %v4324_v54  ;;  %3892 = vmatprep.mubr.msk.f32.mxu0 %vm4221_vm1, %v4220_v0  ;;  %v2205_v54 = vpop.permute.xlu1 %2204 }
 0x2ea   :  { %3900 = vmatprep.subr.mxu0 %v4220_v0 }
 0x2ec   :  { %3893 = vmatmul.mubr.msk.f32.vlgmr.msra.gmra.mxu0 %vm399_vm2, %v4330_v60 }
 0x2ed   :  { %3901 = vmatpush3.xpose.msk.msra.mxu0 %vm399_vm2, %v1221_v44  ;;  %3902 = vmatprep.mubr.msk.f32.mxu0 %vm4221_vm1, %v4220_v0  ;;  %v2533_v55 = vpop.permute.xlu1 %2532 }
 0x2ee   :  { %v4066_v47 = vpop.eup %4065  ;;  %3910 = vmatprep.subr.mxu0 %v4220_v0 }
 0x2ef   :  { %v488_v48 = vmul.f32 %v4066_v47, %v4064_v36 }
 0x2f0   :  { %3903 = vmatmul.mubr.msk.f32.vlgmr.msra.gmra.mxu0 %vm399_vm2, %v1219_v46 }
 0x2f1   :  { %3858 = vmatmul.mubr.msk.f32.vlgmr.msra.gmra.mxu1 %vm477_vm3, %v488_v48  ;;  %3911 = vmatpush3.xpose.msk.msra.mxu0 %vm399_vm2, %v4341_v4  ;;  %v2861_v57 = vpop.permute.xlu1 %2860 }
 0x2f2   :  { %3861 = vmatpush3.xpose.msk.msra.mxu1 %vm399_vm2, %v565_v40  ;;  %3912 = vmatprep.mubr.msk.f32.mxu0 %vm4221_vm1, %v4220_v0 }
 0x2f3   :  { %3862 = vmatprep.mubr.msk.f32.mxu1 %vm4221_vm1, %v4220_v0  ;;  %3920 = vmatprep.subr.mxu0 %v4220_v0 }
 0x2f4   :  { %3913 = vmatmul.mubr.msk.f32.vlgmr.msra.gmra.mxu0 %vm399_vm2, %v4351_v9  ;;  %3865 = vmatprep.subr.mxu1 %v4220_v0 }
 0x2f5   :  { %3863 = vmatmul.mubr.msk.f32.vlgmr.msra.gmra.mxu1 %vm399_vm2, %v563_v41  ;;  %3921 = vmatpush3.xpose.msk.msra.mxu0 %vm399_vm2, %v1549_v49 }
 0x2f6   :  { %3922 = vmatprep.mubr.msk.f32.mxu0 %vm4221_vm1, %v4220_v0  ;;  %3930 = vmatprep.subr.mxu0 %v4220_v0 }
 0x2f7   :  { %3867 = vmatprep.mubr.msk.f32.mxu1 %vm4221_vm1, %v4220_v0 }
 0x2f8   :  { %3923 = vmatmul.mubr.msk.f32.vlgmr.msra.gmra.mxu0 %vm399_vm2, %v1547_v50 }
 0x2f9   :  { %3931 = vmatpush3.xpose.msk.msra.mxu0 %vm399_vm2, %v4361_v15  ;;  %3932 = vmatprep.mubr.msk.f32.mxu0 %vm4221_vm1, %v4220_v0 }
 0x2fa   :  { %3940 = vmatprep.subr.mxu0 %v4220_v0 }
 0x2fc   :  { %3933 = vmatmul.mubr.msk.f32.vlgmr.msra.gmra.mxu0 %vm399_vm2, %v4320_v52  ;;  %v2203_v52 = vpop.permute.xlu0 %2202 }
 0x2fd   :  { %3941 = vmatpush3.xpose.msk.msra.mxu0 %vm399_vm2, %v1877_v51  ;;  %3942 = vmatprep.mubr.msk.f32.mxu0 %vm4221_vm1, %v4220_v0 }
 0x2fe   :  { %3950 = vmatprep.subr.mxu0 %v4220_v0 }
 0x300   :  { %3943 = vmatmul.mubr.msk.f32.vlgmr.msra.gmra.mxu0 %vm399_vm2, %v1875_v53 }
 0x301   :  { %3951 = vmatpush3.xpose.msk.msra.mxu0 %vm399_vm2, %v4366_v17  ;;  %3952 = vmatprep.mubr.msk.f32.mxu0 %vm4221_vm1, %v4220_v0 }
 0x302   :  { %3960 = vmatprep.subr.mxu0 %v4220_v0 }
 0x304   :  { %3953 = vmatmul.mubr.msk.f32.vlgmr.msra.gmra.mxu0 %vm399_vm2, %v4326_v56  ;;  %v2531_v56 = vpop.permute.xlu0 %2530 }
 0x305   :  { %3961 = vmatpush3.xpose.msk.msra.mxu0 %vm399_vm2, %v2205_v54  ;;  %3962 = vmatprep.mubr.msk.f32.mxu0 %vm4221_vm1, %v4220_v0 }
 0x306   :  { %3970 = vmatprep.subr.mxu0 %v4220_v0 }
 0x308   :  { %3963 = vmatmul.mubr.msk.f32.vlgmr.msra.gmra.mxu0 %vm399_vm2, %v2203_v52 }
 0x309   :  { %3971 = vmatpush3.xpose.msk.msra.mxu0 %vm399_vm2, %v4371_v19  ;;  %3972 = vmatprep.mubr.msk.f32.mxu0 %vm4221_vm1, %v4220_v0 }
 0x30a   :  { %3980 = vmatprep.subr.mxu0 %v4220_v0 }
 0x30c   :  { %3973 = vmatmul.mubr.msk.f32.vlgmr.msra.gmra.mxu0 %vm399_vm2, %v4328_v58  ;;  %v2859_v58 = vpop.permute.xlu0 %2858 }
 0x30d   :  { %3981 = vmatpush3.xpose.msk.msra.mxu0 %vm399_vm2, %v2533_v55  ;;  %3982 = vmatprep.mubr.msk.f32.mxu0 %vm4221_vm1, %v4220_v0 }
 0x30e   :  { %3990 = vmatprep.subr.mxu0 %v4220_v0 }
 0x310   :  { %3983 = vmatmul.mubr.msk.f32.vlgmr.msra.gmra.mxu0 %vm399_vm2, %v2531_v56 }
 0x311   :  { %3991 = vmatpush3.xpose.msk.msra.mxu0 %vm399_vm2, %v4376_v21  ;;  %3992 = vmatprep.mubr.msk.f32.mxu0 %vm4221_vm1, %v4220_v0 }
 0x312   :  { %4000 = vmatprep.subr.mxu0 %v4220_v0 }
 0x314   :  { %3993 = vmatmul.mubr.msk.f32.vlgmr.msra.gmra.mxu0 %vm399_vm2, %v4334_v63 }
 0x315   :  { %4001 = vmatpush3.xpose.msk.msra.mxu0 %vm399_vm2, %v2861_v57  ;;  %4002 = vmatprep.mubr.msk.f32.mxu0 %vm4221_vm1, %v4220_v0 }
 0x316   :  { %4010 = vmatprep.subr.mxu0 %v4220_v0 }
 0x318   :  { %4003 = vmatmul.mubr.msk.f32.vlgmr.msra.gmra.mxu0 %vm399_vm2, %v2859_v58 }
 0x319   :  { %4012 = vmatprep.mubr.msk.f32.mxu0 %vm4221_vm1, %v4220_v0 }
 0x325   :  { %v808_v58 = vpop.xlane.xlu0 %807 }
 0x3a8   :  { %v964_v59 = vpop.f32.mrf.mxu0 }
 0x3a9   :  { %v4490_v60 = vmul.f32 0.125, %v964_v59  ;;  %v809_v59 = vsub.f32 %v4401_v38, %v808_v58 }
 0x3aa   :  { %v3884_v61 = vpop.f32.mrf.mxu0 }
 0x3ab   :  { %v969_v62 = vsel %vm477_vm3, %v4490_v60, -inf  ;;  %v810_v61 = vmul.f32 1.442695, %v809_v59 }
 0x3ac   :  { %970 = vmax.xlane.f32.xlu0 %v969_v62  ;;  %v1129_v63 = vpop.f32.mrf.mxu0 }
 0x3ad   :  { %v4494_v1 = vmul.f32 0.125, %v1129_v63  ;;  %4067 = vpow2.f32 %v810_v61 }
 0x3ae   :  { %v3894_v3 = vpop.f32.mrf.mxu0 }
 0x3af   :  { %v1134_v4 = vsel %vm477_vm3, %v4494_v1, -inf }
 0x3b0   :  { %1135 = vmax.xlane.f32.xlu1 %v1134_v4  ;;  %v1292_v6 = vpop.f32.mrf.mxu0 }
 0x3b1   :  { %v4498_v9 = vmul.f32 0.125, %v1292_v6  ;;  %v558_v10 = vpop.f32.mrf.mxu1 }
 0x3b2   :  { %v3904_v11 = vpop.f32.mrf.mxu0  ;;  %4011 = vmatpush3.xpose.msk.msra.mxu0 %vm399_vm2, %v558_v10 }
 0x3b3   :  { %v3859_v13 = vpop.f32.mrf.mxu1  ;;  %v1297_v15 = vsel %vm477_vm3, %v4498_v9, -inf  ;;  %4020 = vmatprep.subr.mxu0 %v4220_v0 }
 0x3b4   :  { %1298 = vmax.xlane.f32.xlu0 %v1297_v15  ;;  %v1457_v16 = vpop.f32.mrf.mxu0 }
 0x3b5   :  { %v4504_v17 = vmul.f32 0.125, %v1457_v16  ;;  %v4506_v18 = vpop.f32.mrf.mxu1 }
 0x3b6   :  { %v3914_v19 = vpop.f32.mrf.mxu0 }
 0x3b7   :  { %v3864_v20 = vpop.f32.mrf.mxu1  ;;  %v1462_v21 = vsel %vm477_vm3, %v4504_v17, -inf }
 0x3b8   :  { %1463 = vmax.xlane.f32.xlu1 %v1462_v21  ;;  %v1620_v22 = vpop.f32.mrf.mxu0 }
 0x3b9   :  { %v4510_v23 = vmul.f32 0.125, %v1620_v22 }
 0x3ba   :  { %v3924_v27 = vpop.f32.mrf.mxu0  ;;  %v4545_v3 = vpop.eup %4067 }
 0x3bb   :  { %v1625_v28 = vsel %vm477_vm3, %v4510_v23, -inf  ;;  %v812_v6 = vsel %vm477_vm3, %v4545_v3, 0.0 }
 0x3bc   :  { %1626 = vmax.xlane.f32.xlu0 %v1625_v28  ;;  %v1785_v29 = vpop.f32.mrf.mxu0 }
 0x3bd   :  { %v4514_v30 = vmul.f32 0.125, %v1785_v29 }
 0x3be   :  { %v3934_v31 = vpop.f32.mrf.mxu0 }
 0x3bf   :  { %v1790_v32 = vsel %vm477_vm3, %v4514_v30, -inf }
 0x3c0   :  { %1791 = vmax.xlane.f32.xlu1 %v1790_v32  ;;  %v1948_v33 = vpop.f32.mrf.mxu0 }
 0x3c1   :  { %v4518_v34 = vmul.f32 0.125, %v1948_v33 }
 0x3c2   :  { %v3944_v35 = vpop.f32.mrf.mxu0 }
 0x3c3   :  { %v1953_v36 = vsel %vm477_vm3, %v4518_v34, -inf }
 0x3c4   :  { %1954 = vmax.xlane.f32.xlu0 %v1953_v36  ;;  %v2113_v37 = vpop.f32.mrf.mxu0 }
 0x3c5   :  { %v4522_v39 = vmul.f32 0.125, %v2113_v37 }
 0x3c6   :  { %v3954_v40 = vpop.f32.mrf.mxu0 }
 0x3c7   :  { %v2118_v41 = vsel %vm477_vm3, %v4522_v39, -inf }
 0x3c8   :  { %2119 = vmax.xlane.f32.xlu1 %v2118_v41  ;;  %v2276_v42 = vpop.f32.mrf.mxu0 }
 0x3c9   :  { %v4526_v43 = vmul.f32 0.125, %v2276_v42 }
 0x3ca   :  { %v3964_v44 = vpop.f32.mrf.mxu0 }
 0x3cb   :  { %v2281_v45 = vsel %vm477_vm3, %v4526_v43, -inf }
 0x3cc   :  { %2282 = vmax.xlane.f32.xlu0 %v2281_v45  ;;  %v2441_v46 = vpop.f32.mrf.mxu0 }
 0x3cd   :  { %v4530_v47 = vmul.f32 0.125, %v2441_v46 }
 0x3ce   :  { %v3974_v48 = vpop.f32.mrf.mxu0 }
 0x3cf   :  { %v2446_v49 = vsel %vm477_vm3, %v4530_v47, -inf }
 0x3d0   :  { %2447 = vmax.xlane.f32.xlu1 %v2446_v49  ;;  %v2604_v50 = vpop.f32.mrf.mxu0 }
 0x3d1   :  { %v4541_v62 = vmul.f32 0.125, %v2604_v50 }
 0x3d2   :  { %v3984_v51 = vpop.f32.mrf.mxu0 }
 0x3d3   :  { %v2609_v63 = vsel %vm477_vm3, %v4541_v62, -inf }
 0x3d4   :  { %v2769_v53 = vpop.f32.mrf.mxu0 }
 0x3d5   :  { %v4534_v54 = vmul.f32 0.125, %v2769_v53 }
 0x3d6   :  { %v3994_v52 = vpop.f32.mrf.mxu0 }
 0x3d7   :  { %v2774_v55 = vsel %vm477_vm3, %v4534_v54, -inf }
 0x3d8   :  { %2775 = vmax.xlane.f32.xlu1 %v2774_v55  ;;  %v2932_v56 = vpop.f32.mrf.mxu0 }
 0x3d9   :  { %v4547_v4 = vmul.f32 0.125, %v2932_v56 }
 0x3da   :  { %v4004_v57 = vpop.f32.mrf.mxu0 }
 0x3e2   :  { %653 = vrot.lane.b32.xlu0 %v4336_v2, %s4222_s3  ;;  %v2937_v2 = vsel %vm477_vm3, %v4547_v4, -inf }
 0x401   :  { %2610 = vmax.xlane.f32.xlu0 %v2609_v63 }
 0x405   :  { %813 = vadd.xlane.f32.xlu0 %v812_v6 }
 0x409   :  { %2938 = vmax.xlane.f32.xlu0 %v2937_v2 }
 0x435   :  { %v971_v38 = vpop.xlane.xlu0 %970 }
 0x436   :  { %v972_v10 = vsub.f32 %v4490_v60, %v971_v38 }
 0x438   :  { %v973_v11 = vmul.f32 1.442695, %v972_v10 }
 0x439   :  { %v1136_v13 = vpop.xlane.xlu1 %1135 }
 0x43a   :  { %4069 = vpow2.f32 %v973_v11  ;;  %v1137_v15 = vsub.f32 %v4494_v1, %v1136_v13 }
 0x43c   :  { %v1138_v16 = vmul.f32 1.442695, %v1137_v15 }
 0x43d   :  { %v1299_v19 = vpop.xlane.xlu0 %1298 }
 0x43e   :  { %4071 = vpow2.f32 %v1138_v16  ;;  %v1300_v20 = vsub.f32 %v4498_v9, %v1299_v19 }
 0x440   :  { %v1301_v21 = vmul.f32 1.442695, %v1300_v20 }
 0x441   :  { %v1464_v22 = vpop.xlane.xlu1 %1463 }
 0x442   :  { %4073 = vpow2.f32 %v1301_v21  ;;  %v1465_v27 = vsub.f32 %v4504_v17, %v1464_v22 }
 0x444   :  { %v1466_v28 = vmul.f32 1.442695, %v1465_v27  ;;  %v4630_v27 = vadd.f32 %v4387_v26, %v4347_v7 }
 0x445   :  { %v1627_v29 = vpop.xlane.xlu0 %1626 }
 0x446   :  { %4075 = vpow2.f32 %v1466_v28  ;;  %v1628_v60 = vsub.f32 %v4510_v23, %v1627_v29 }
 0x447   :  { %v4558_v31 = vpop.eup %4069 }
 0x448   :  { %v1629_v32 = vmul.f32 1.442695, %v1628_v60  ;;  %v975_v1 = vsel %vm477_vm3, %v4558_v31, 0.0 }
 0x449   :  { %v1792_v33 = vpop.xlane.xlu1 %1791  ;;  %976 = vadd.xlane.f32.xlu1 %v975_v1 }
 0x44a   :  { %4077 = vpow2.f32 %v1629_v32  ;;  %v1793_v9 = vsub.f32 %v4514_v30, %v1792_v33 }
 0x44b   :  { %v4563_v35 = vpop.eup %4071 }
 0x44c   :  { %v1794_v36 = vmul.f32 1.442695, %v1793_v9  ;;  %v1140_v17 = vsel %vm477_vm3, %v4563_v35, 0.0 }
 0x44d   :  { %1141 = vadd.xlane.f32.xlu0 %v1140_v17  ;;  %v1955_v37 = vpop.xlane.xlu0 %1954 }
 0x44e   :  { %4079 = vpow2.f32 %v1794_v36  ;;  %v1956_v23 = vsub.f32 %v4518_v34, %v1955_v37 }
 0x44f   :  { %v4568_v40 = vpop.eup %4073 }
 0x450   :  { %v1957_v41 = vmul.f32 1.442695, %v1956_v23  ;;  %v1303_v42 = vsel %vm477_vm3, %v4568_v40, 0.0 }
 0x451   :  { %v2120_v44 = vpop.xlane.xlu1 %2119  ;;  %1304 = vadd.xlane.f32.xlu1 %v1303_v42 }
 0x452   :  { %v2121_v30 = vsub.f32 %v4522_v39, %v2120_v44  ;;  %4081 = vpow2.f32 %v1957_v41  ;;  %v640_v39 = vmul.f32 0.125, %v4506_v18  ;;  %v4598_v18 = vadd.f32 %v4343_v5, %v4347_v7 }
 0x453   :  { %v4573_v45 = vpop.eup %4075 }
 0x454   :  { %v2122_v46 = vmul.f32 1.442695, %v2121_v30  ;;  %v1468_v48 = vsel %vm477_vm3, %v4573_v45, 0.0  ;;  %v641_v55 = vsel %vm477_vm3, %v640_v39, -inf }
 0x455   :  { %1469 = vadd.xlane.f32.xlu0 %v1468_v48  ;;  %v2283_v49 = vpop.xlane.xlu0 %2282 }
 0x456   :  { %4083 = vpow2.f32 %v2122_v46  ;;  %v2284_v6 = vsub.f32 %v4526_v43, %v2283_v49 }
 0x457   :  { %v4577_v34 = vpop.eup %4077 }
 0x458   :  { %v1631_v50 = vsel %vm477_vm3, %v4577_v34, 0.0  ;;  %v2285_v38 = vmul.f32 1.442695, %v2284_v6 }
 0x459   :  { %1632 = vadd.xlane.f32.xlu1 %v1631_v50  ;;  %v654_v51 = vpop.permute.xlu0 %653  ;;  %v2448_v61 = vpop.xlane.xlu1 %2447 }
 0x45a   :  { %3866 = vmatpush3.msra.mxu1 %v654_v51  ;;  %v2449_v10 = vsub.f32 %v4530_v47, %v2448_v61  ;;  %4085 = vpow2.f32 %v2285_v38 }
 0x45b   :  { %v4581_v53 = vpop.eup %4079  ;;  %3875 = vmatprep.subr.mxu1 %v4220_v0 }
 0x45c   :  { %v1796_v52 = vsel %vm477_vm3, %v4581_v53, 0.0  ;;  %v2450_v13 = vmul.f32 1.442695, %v2449_v10 }
 0x45d   :  { %1797 = vadd.xlane.f32.xlu1 %v1796_v52 }
 0x45f   :  { %v4588_v56 = vpop.eup %4081 }
 0x460   :  { %v1959_v59 = vsel %vm477_vm3, %v4588_v56, 0.0 }
 0x461   :  { %642 = vmax.xlane.f32.xlu1 %v641_v55  ;;  %v2776_v63 = vpop.xlane.xlu1 %2775 }
 0x462   :  { %v2777_v2 = vsub.f32 %v4534_v54, %v2776_v63 }
 0x463   :  { %v4590_v57 = vpop.eup %4083 }
 0x464   :  { %v2124_v58 = vsel %vm477_vm3, %v4590_v57, 0.0  ;;  %v2778_v11 = vmul.f32 1.442695, %v2777_v2 }
 0x465   :  { %2125 = vadd.xlane.f32.xlu0 %v2124_v58  ;;  %1960 = vadd.xlane.f32.xlu1 %v1959_v59 }
 0x466   :  { %4087 = vpow2.f32 %v2778_v11 }
 0x467   :  { %4089 = vpow2.f32 %v2450_v13  ;;  %v4608_v19 = vpop.eup %4085 }
 0x468   :  { %v2287_v47 = vsel %vm477_vm3, %v4608_v19, 0.0 }
 0x473   :  { %v4610_v20 = vpop.eup %4087 }
 0x474   :  { %v2780_v43 = vsel %vm477_vm3, %v4610_v20, 0.0  ;;  %v4616_v54 = vpop.eup %4089 }
 0x476   :  { %981 = vrot.lane.b32.xlu1 %v4598_v18, %s4222_s3 }
 0x47b   :  { %1309 = vrot.lane.b32.xlu0 %v4349_v8, %s4222_s3 }
 0x48a   :  { %v2611_v5 = vpop.xlane.xlu0 %2610 }
 0x48b   :  { %v2612_v15 = vsub.f32 %v4541_v62, %v2611_v5  ;;  %v2452_v62 = vsel %vm477_vm3, %v4616_v54, 0.0 }
 0x48d   :  { %v2613_v16 = vmul.f32 1.442695, %v2612_v15 }
 0x48e   :  { %v814_v7 = vpop.xlane.xlu0 %813 }
 0x48f   :  { %4091 = vpow2.f32 %v2613_v16 }
 0x492   :  { %v2939_v26 = vpop.xlane.xlu0 %2938 }
 0x493   :  { %v2940_v37 = vsub.f32 %v4547_v4, %v2939_v26 }
 0x495   :  { %v2941_v23 = vmul.f32 1.442695, %v2940_v37 }
 0x49a   :  { %2781 = vadd.xlane.f32.xlu0 %v2780_v43  ;;  %2288 = vadd.xlane.f32.xlu1 %v2287_v47 }
 0x49c   :  { %v4620_v21 = vpop.eup %4091 }
 0x49d   :  { %v2615_v22 = vsel %vm477_vm3, %v4620_v21, 0.0 }
 0x49e   :  { %2453 = vadd.xlane.f32.xlu1 %v2452_v62 }
 0x4a2   :  { %2616 = vadd.xlane.f32.xlu1 %v2615_v22 }
 0x4b0   :  { %1965 = vrot.lane.b32.xlu0 %v4358_v14, %s4222_s3 }
 0x4b4   :  { %2621 = vrot.lane.b32.xlu0 %v4385_v25, %s4222_s3 }
 0x4b8   :  { %2949 = vrot.lane.b32.xlu0 %v4630_v27, %s4222_s3 }
 0x4d2   :  { %v977_v28 = vpop.xlane.xlu1 %976 }
 0x4d6   :  { %v1142_v4 = vpop.xlane.xlu0 %1141 }
 0x4da   :  { %v1305_v29 = vpop.xlane.xlu1 %1304 }
 0x4de   :  { %v1470_v55 = vpop.xlane.xlu0 %1469 }
 0x4e2   :  { %v1633_v60 = vpop.xlane.xlu1 %1632 }
 0x4e6   :  { %v1798_v32 = vpop.xlane.xlu1 %1797 }
 0x4ea   :  { %v643_v1 = vpop.xlane.xlu1 %642 }
 0x4eb   :  { %v644_v33 = vsub.f32 %v640_v39, %v643_v1 }
 0x4ed   :  { %v645_v9 = vmul.f32 1.442695, %v644_v33 }
 0x4ee   :  { %v1961_v44 = vpop.xlane.xlu1 %1960  ;;  %v2126_v61 = vpop.xlane.xlu0 %2125 }
 0x4ef   :  { %4093 = vpow2.f32 %v645_v9 }
 0x4f0   :  { %4095 = vpow2.f32 %v2941_v23 }
 0x4f2   :  { %v982_v30 = vpop.permute.xlu1 %981  ;;  %v1310_v2 = vpop.permute.xlu0 %1309 }
 0x4fc   :  { %v4094_v36 = vpop.eup %4093 }
 0x4fd   :  { %v647_v17 = vsel %vm477_vm3, %v4094_v36, 0.0  ;;  %v4638_v41 = vpop.eup %4095 }
 0x4fe   :  { %648 = vadd.xlane.f32.xlu1 %v647_v17  ;;  %v2943_v42 = vsel %vm477_vm3, %v4638_v41, 0.0 }
 0x50f   :  { %1637 = vrot.lane.b32.xlu1 %v4356_v12, %s4222_s3 }
 0x523   :  { %v2289_v46 = vpop.xlane.xlu1 %2288 }
 0x527   :  { %v4644_v48 = vpop.xlane.xlu1 %2453 }
 0x52b   :  { %v4646_v49 = vpop.xlane.xlu1 %2616 }
 0x533   :  { %2944 = vadd.xlane.f32.xlu1 %v2943_v42 }
 0x544   :  { %2293 = vrot.lane.b32.xlu1 %v4383_v24, %s4222_s3 }
 0x587   :  { %v649_v50 = vpop.xlane.xlu1 %648 }
 0x588   :  { %4097 = vrcp.f32 %v649_v50 }
 0x589   :  { %4099 = vrcp.f32 %v814_v7 }
 0x58a   :  { %4101 = vrcp.f32 %v977_v28 }
 0x58b   :  { %4103 = vrcp.f32 %v1142_v4  ;;  %v1638_v10 = vpop.permute.xlu1 %1637 }
 0x58c   :  { %4105 = vrcp.f32 %v1305_v29 }
 0x58d   :  { %4107 = vrcp.f32 %v1470_v55 }
 0x58e   :  { %4109 = vrcp.f32 %v1633_v60 }
 0x58f   :  { %4111 = vrcp.f32 %v1798_v32 }
 0x590   :  { %4113 = vrcp.f32 %v1961_v44 }
 0x591   :  { %4115 = vrcp.f32 %v2126_v61 }
 0x592   :  { %4117 = vrcp.f32 %v2289_v46 }
 0x593   :  { %4119 = vrcp.f32 %v4644_v48 }
 0x594   :  { %4121 = vrcp.f32 %v4646_v49 }
 0x595   :  { %v4098_v51 = vpop.eup %4097 }
 0x596   :  { %v651_v39 = vmul.f32 %v4098_v51, %v4094_v36  ;;  %v4100_v52 = vpop.eup %4099 }
 0x597   :  { %v816_v58 = vmul.f32 %v4100_v52, %v4545_v3  ;;  %v4102_v59 = vpop.eup %4101 }
 0x598   :  { %3868 = vmatmul.mubr.msk.f32.vlgmr.msra.gmra.mxu1 %vm477_vm3, %v651_v39  ;;  %v4104_v63 = vpop.eup %4103 }
 0x599   :  { %3876 = vmatpush3.msra.mxu1 %v4598_v18  ;;  %3877 = vmatprep.mubr.msk.f32.mxu1 %vm4221_vm1, %v4220_v0  ;;  %v979_v18 = vmul.f32 %v4102_v59, %v4558_v31  ;;  %v1144_v3 = vmul.f32 %v4104_v63, %v4563_v35  ;;  %v4106_v6 = vpop.eup %4105 }
 0x59a   :  { %3885 = vmatprep.subr.mxu1 %v4220_v0  ;;  %v4108_v31 = vpop.eup %4107 }
 0x59b   :  { %v1472_v35 = vmul.f32 %v4108_v31, %v4573_v45  ;;  %v4110_v38 = vpop.eup %4109 }
 0x59c   :  { %3878 = vmatmul.mubr.msk.f32.vlgmr.msra.gmra.mxu1 %vm477_vm3, %v816_v58  ;;  %v4112_v11 = vpop.eup %4111 }
 0x59d   :  { %3886 = vmatpush3.msra.mxu1 %v982_v30  ;;  %3887 = vmatprep.mubr.msk.f32.mxu1 %vm4221_vm1, %v4220_v0  ;;  %v1800_v45 = vmul.f32 %v4112_v11, %v4581_v53  ;;  %v4114_v13 = vpop.eup %4113 }
 0x59e   :  { %3895 = vmatprep.subr.mxu1 %v4220_v0 }
 0x5a0   :  { %3888 = vmatmul.mubr.msk.f32.vlgmr.msra.gmra.mxu1 %vm477_vm3, %v979_v18 }
 0x5a1   :  { %3896 = vmatpush3.msra.mxu1 %v4349_v8  ;;  %3897 = vmatprep.mubr.msk.f32.mxu1 %vm4221_vm1, %v4220_v0  ;;  %v1307_v8 = vmul.f32 %v4106_v6, %v4568_v40  ;;  %v2782_v40 = vpop.xlane.xlu0 %2781 }
 0x5a2   :  { %3905 = vmatprep.subr.mxu1 %v4220_v0  ;;  %4123 = vrcp.f32 %v2782_v40 }
 0x5a4   :  { %3898 = vmatmul.mubr.msk.f32.vlgmr.msra.gmra.mxu1 %vm477_vm3, %v1144_v3 }
 0x5a5   :  { %3906 = vmatpush3.msra.mxu1 %v1310_v2  ;;  %3907 = vmatprep.mubr.msk.f32.mxu1 %vm4221_vm1, %v4220_v0  ;;  %v1966_v5 = vpop.permute.xlu0 %1965 }
 0x5a6   :  { %3915 = vmatprep.subr.mxu1 %v4220_v0 }
 0x5a8   :  { %3908 = vmatmul.mubr.msk.f32.vlgmr.msra.gmra.mxu1 %vm477_vm3, %v1307_v8 }
 0x5a9   :  { %3916 = vmatpush3.msra.mxu1 %v4356_v12  ;;  %3917 = vmatprep.mubr.msk.f32.mxu1 %vm4221_vm1, %v4220_v0  ;;  %v1635_v12 = vmul.f32 %v4110_v38, %v4577_v34  ;;  %v4116_v34 = vpop.eup %4115  ;;  %v2622_v62 = vpop.permute.xlu0 %2621 }
 0x5aa   :  { %3925 = vmatprep.subr.mxu1 %v4220_v0  ;;  %v2128_v53 = vmul.f32 %v4116_v34, %v4590_v57  ;;  %v4118_v16 = vpop.eup %4117 }
 0x5ab   :  { %v2291_v43 = vmul.f32 %v4118_v16, %v4608_v19 }
 0x5ac   :  { %3918 = vmatmul.mubr.msk.f32.vlgmr.msra.gmra.mxu1 %vm477_vm3, %v1472_v35 }
 0x5ad   :  { %3926 = vmatpush3.msra.mxu1 %v1638_v10  ;;  %3927 = vmatprep.mubr.msk.f32.mxu1 %vm4221_vm1, %v4220_v0  ;;  %v2950_v28 = vpop.permute.xlu0 %2949 }
 0x5ae   :  { %3935 = vmatprep.subr.mxu1 %v4220_v0 }
 0x5b0   :  { %3928 = vmatmul.mubr.msk.f32.vlgmr.msra.gmra.mxu1 %vm477_vm3, %v1635_v12 }
 0x5b1   :  { %3936 = vmatpush3.msra.mxu1 %v4358_v14  ;;  %3937 = vmatprep.mubr.msk.f32.mxu1 %vm4221_vm1, %v4220_v0  ;;  %v1963_v14 = vmul.f32 %v4114_v13, %v4588_v56 }
 0x5b2   :  { %3945 = vmatprep.subr.mxu1 %v4220_v0 }
 0x5b4   :  { %3938 = vmatmul.mubr.msk.f32.vlgmr.msra.gmra.mxu1 %vm477_vm3, %v1800_v45 }
 0x5b5   :  { %3946 = vmatpush3.msra.mxu1 %v1966_v5  ;;  %3947 = vmatprep.mubr.msk.f32.mxu1 %vm4221_vm1, %v4220_v0 }
 0x5b6   :  { %3955 = vmatprep.subr.mxu1 %v4220_v0 }
 0x5b8   :  { %3948 = vmatmul.mubr.msk.f32.vlgmr.msra.gmra.mxu1 %vm477_vm3, %v1963_v14 }
 0x5b9   :  { %3956 = vmatpush3.msra.mxu1 %v4383_v24  ;;  %3957 = vmatprep.mubr.msk.f32.mxu1 %vm4221_vm1, %v4220_v0  ;;  %v4120_v24 = vpop.eup %4119 }
 0x5ba   :  { %3965 = vmatprep.subr.mxu1 %v4220_v0  ;;  %v2456_v57 = vmul.f32 %v4120_v24, %v4616_v54  ;;  %v4122_v47 = vpop.eup %4121 }
 0x5bb   :  { %v2619_v19 = vmul.f32 %v4122_v47, %v4620_v21 }
 0x5bc   :  { %3958 = vmatmul.mubr.msk.f32.vlgmr.msra.gmra.mxu1 %vm477_vm3, %v2128_v53  ;;  %v2945_v15 = vpop.xlane.xlu1 %2944 }
 0x5bd   :  { %3967 = vmatprep.mubr.msk.f32.mxu1 %vm4221_vm1, %v4220_v0  ;;  %4125 = vrcp.f32 %v2945_v15 }
 0x5c0   :  { %v2294_v56 = vpop.permute.xlu1 %2293 }
 0x5c1   :  { %3966 = vmatpush3.msra.mxu1 %v2294_v56 }
 0x5c2   :  { %3968 = vmatmul.mubr.msk.f32.vlgmr.msra.gmra.mxu1 %vm477_vm3, %v2291_v43  ;;  %3975 = vmatprep.subr.mxu1 %v4220_v0 }
 0x5c3   :  { %3976 = vmatpush3.msra.mxu1 %v4385_v25  ;;  %3977 = vmatprep.mubr.msk.f32.mxu1 %vm4221_vm1, %v4220_v0  ;;  %v4124_v25 = vpop.eup %4123 }
 0x5c4   :  { %3985 = vmatprep.subr.mxu1 %v4220_v0  ;;  %v2784_v54 = vmul.f32 %v4124_v25, %v4610_v20 }
 0x5c6   :  { %3978 = vmatmul.mubr.msk.f32.vlgmr.msra.gmra.mxu1 %vm477_vm3, %v2456_v57 }
 0x5c7   :  { %3986 = vmatpush3.msra.mxu1 %v2622_v62  ;;  %3987 = vmatprep.mubr.msk.f32.mxu1 %vm4221_vm1, %v4220_v0 }
 0x5c8   :  { %3995 = vmatprep.subr.mxu1 %v4220_v0 }
 0x5ca   :  { %3988 = vmatmul.mubr.msk.f32.vlgmr.msra.gmra.mxu1 %vm477_vm3, %v2619_v19  ;;  %v4126_v22 = vpop.eup %4125 }
 0x5cb   :  { %3996 = vmatpush3.msra.mxu1 %v4630_v27  ;;  %3997 = vmatprep.mubr.msk.f32.mxu1 %vm4221_vm1, %v4220_v0  ;;  %v2947_v21 = vmul.f32 %v4126_v22, %v4638_v41 }
 0x5cc   :  { %4005 = vmatprep.subr.mxu1 %v4220_v0 }
 0x5ce   :  { %3998 = vmatmul.mubr.msk.f32.vlgmr.msra.gmra.mxu1 %vm477_vm3, %v2784_v54 }
 0x5cf   :  { %4006 = vmatpush3.msra.mxu1 %v2950_v28  ;;  %4007 = vmatprep.mubr.msk.f32.mxu1 %vm4221_vm1, %v4220_v0 }
 0x5d0   :  { %4015 = vmatprep.subr.mxu1 %v4220_v0 }
 0x5d2   :  { %4008 = vmatmul.mubr.msk.f32.vlgmr.msra.gmra.mxu1 %vm477_vm3, %v2947_v21 }
 0x5d3   :  { %4017 = vmatprep.mubr.msk.f32.mxu1 %vm4221_vm1, %v4220_v0 }
 0x658   :  { %v725_v27 = vpop.f32.mrf.mxu1 }
 0x659   :  { %4016 = vmatpush3.xpose.msk.msra.mxu1 %vm399_vm2, %v725_v27 }
 0x65a   :  { %v3869_v20 = vpop.f32.mrf.mxu1  ;;  %4025 = vmatprep.subr.mxu1 %v4220_v0 }
 0x65c   :  { %v886_v29 = vpop.f32.mrf.mxu1 }
 0x65e   :  { %v3879_v60 = vpop.f32.mrf.mxu1 }
 0x660   :  { %v1053_v32 = vpop.f32.mrf.mxu1 }
 0x662   :  { %v3889_v1 = vpop.f32.mrf.mxu1 }
 0x664   :  { %v1214_v33 = vpop.f32.mrf.mxu1 }
 0x666   :  { %v3899_v9 = vpop.f32.mrf.mxu1 }
 0x668   :  { %v1381_v36 = vpop.f32.mrf.mxu1 }
 0x66a   :  { %v3909_v17 = vpop.f32.mrf.mxu1 }
 0x66c   :  { %v1542_v7 = vpop.f32.mrf.mxu1 }
 0x66e   :  { %v3919_v26 = vpop.f32.mrf.mxu1 }
 0x670   :  { %v1709_v37 = vpop.f32.mrf.mxu1 }
 0x672   :  { %v3929_v23 = vpop.f32.mrf.mxu1 }
 0x674   :  { %v1870_v41 = vpop.f32.mrf.mxu1 }
 0x675   :  { %4013 = vmatmul.mubr.msk.f32.vlgmr.msra.gmra.mxu0 %vm399_vm2, %v1870_v41 }
 0x676   :  { %4021 = vmatpush3.xpose.msk.msra.mxu0 %vm399_vm2, %v886_v29  ;;  %v3939_v42 = vpop.f32.mrf.mxu1  ;;  %4022 = vmatprep.mubr.msk.f32.mxu0 %vm4221_vm1, %v4220_v0 }
 0x677   :  { %4030 = vmatprep.subr.mxu0 %v4220_v0 }
 0x678   :  { %v2037_v44 = vpop.f32.mrf.mxu1 }
 0x679   :  { %4018 = vmatmul.mubr.msk.f32.vlgmr.msra.gmra.mxu1 %vm399_vm2, %v2037_v44 }
 0x67a   :  { %4026 = vmatpush3.xpose.msk.msra.mxu1 %vm399_vm2, %v1053_v32  ;;  %v3949_v30 = vpop.f32.mrf.mxu1  ;;  %4027 = vmatprep.mubr.msk.f32.mxu1 %vm4221_vm1, %v4220_v0 }
 0x67b   :  { %4035 = vmatprep.subr.mxu1 %v4220_v0 }
 0x67c   :  { %v2198_v46 = vpop.f32.mrf.mxu1 }
 0x67d   :  { %4023 = vmatmul.mubr.msk.f32.vlgmr.msra.gmra.mxu0 %vm399_vm2, %v2198_v46 }
 0x67e   :  { %4031 = vmatpush3.xpose.msk.msra.mxu0 %vm399_vm2, %v1214_v33  ;;  %v3959_v48 = vpop.f32.mrf.mxu1  ;;  %4032 = vmatprep.mubr.msk.f32.mxu0 %vm4221_vm1, %v4220_v0 }
 0x67f   :  { %4040 = vmatprep.subr.mxu0 %v4220_v0 }
 0x682   :  { %v2365_v49 = vpop.f32.mrf.mxu1 }
 0x683   :  { %4028 = vmatmul.mubr.msk.f32.vlgmr.msra.gmra.mxu1 %vm399_vm2, %v2365_v49 }
 0x684   :  { %4036 = vmatpush3.xpose.msk.msra.mxu1 %vm399_vm2, %v1381_v36  ;;  %v3969_v50 = vpop.f32.mrf.mxu1  ;;  %4037 = vmatprep.mubr.msk.f32.mxu1 %vm4221_vm1, %v4220_v0 }
 0x685   :  { %4045 = vmatprep.subr.mxu1 %v4220_v0 }
 0x686   :  { %v2526_v4 = vpop.f32.mrf.mxu1 }
 0x687   :  { %4033 = vmatmul.mubr.msk.f32.vlgmr.msra.gmra.mxu0 %vm399_vm2, %v2526_v4 }
 0x688   :  { %4041 = vmatpush3.xpose.msk.msra.mxu0 %vm399_vm2, %v1542_v7  ;;  %v3979_v51 = vpop.f32.mrf.mxu1  ;;  %4042 = vmatprep.mubr.msk.f32.mxu0 %vm4221_vm1, %v4220_v0 }
 0x68a   :  { %v2693_v39 = vpop.f32.mrf.mxu1 }
 0x68b   :  { %4038 = vmatmul.mubr.msk.f32.vlgmr.msra.gmra.mxu1 %vm399_vm2, %v2693_v39 }
 0x68c   :  { %4046 = vmatpush3.xpose.msk.msra.mxu1 %vm399_vm2, %v1709_v37  ;;  %v3989_v52 = vpop.f32.mrf.mxu1  ;;  %4047 = vmatprep.mubr.msk.f32.mxu1 %vm4221_vm1, %v4220_v0 }
 0x68e   :  { %v2854_v55 = vpop.f32.mrf.mxu1 }
 0x68f   :  { %4043 = vmatmul.mubr.msk.f32.vlgmr.msra.gmra.mxu0 %vm399_vm2, %v2854_v55 }
 0x690   :  { %v3999_v58 = vpop.f32.mrf.mxu1 }
 0x692   :  { %v3021_v59 = vpop.f32.mrf.mxu1 }
 0x693   :  { %4048 = vmatmul.mubr.msk.f32.vlgmr.msra.gmra.mxu1 %vm399_vm2, %v3021_v59 }
 0x694   :  { %v4009_v61 = vpop.f32.mrf.mxu1 }
 0x735   :  { %v3097_v18 = vpop.f32.mrf.mxu0 }
 0x736   :  { %v3101_v43 = vmul.f32 0.125, %v3097_v18 }
 0x737   :  { %v4014_v63 = vpop.f32.mrf.mxu0 }
 0x739   :  { %v3174_v3 = vpop.f32.mrf.mxu1 }
 0x73a   :  { %v3178_v6 = vmul.f32 0.125, %v3174_v3 }
 0x73b   :  { %v4019_v2 = vpop.f32.mrf.mxu1 }
 0x73c   :  { %3334 = vrot.lane.b32.xlu0 %v3178_v6, %s4216_s21 }
 0x73d   :  { %v3251_v8 = vpop.f32.mrf.mxu0 }
 0x73e   :  { %v3255_v31 = vmul.f32 0.125, %v3251_v8 }
 0x73f   :  { %v4024_v35 = vpop.f32.mrf.mxu0 }
 0x740   :  { %3338 = vrot.lane.b32.xlu0 %v3255_v31, %s4223_s7 }
 0x743   :  { %v3328_v0 = vpop.f32.mrf.mxu1 }
 0x744   :  { %v3332_v38 = vmul.f32 0.125, %v3328_v0 }
 0x745   :  { %v4029_v10 = vpop.f32.mrf.mxu1 }
 0x746   :  { %3342 = vrot.lane.b32.xlu1 %v3332_v38, %s4224_s8 }
 0x747   :  { %v3423_v40 = vpop.f32.mrf.mxu0 }
 0x748   :  { %v3427_v54 = vmul.f32 0.125, %v3423_v40 }
 0x749   :  { %v4034_v12 = vpop.f32.mrf.mxu0 }
 0x74b   :  { %v3500_v11 = vpop.f32.mrf.mxu1 }
 0x74c   :  { %v3504_v45 = vmul.f32 0.125, %v3500_v11 }
 0x74d   :  { %v4039_v13 = vpop.f32.mrf.mxu1 }
 0x74e   :  { %3660 = vrot.lane.b32.xlu0 %v3504_v45, %s4216_s21 }
 0x74f   :  { %v3577_v5 = vpop.f32.mrf.mxu0 }
 0x750   :  { %v3581_v14 = vmul.f32 0.125, %v3577_v5 }
 0x751   :  { %v4044_v34 = vpop.f32.mrf.mxu0 }
 0x752   :  { %3664 = vrot.lane.b32.xlu1 %v3581_v14, %s4223_s7 }
 0x753   :  { %v3654_v53 = vpop.f32.mrf.mxu1 }
 0x754   :  { %v3658_v15 = vmul.f32 0.125, %v3654_v53 }
 0x755   :  { %v4049_v16 = vpop.f32.mrf.mxu1 }
 0x756   :  { %3668 = vrot.lane.b32.xlu0 %v3658_v15, %s4224_s8 }
 0x7ae   :  { %v3335_v56 = vpop.permute.xlu0 %3334 }
 0x7af   :  { %v3345_v57 = vsel %vm477_vm3, %v3101_v43, %v3335_v56 }
 0x7b2   :  { %v3339_v24 = vpop.permute.xlu0 %3338 }
 0x7b3   :  { %v3347_v47 = vsel %vm3346_vm4, %v3345_v57, %v3339_v24 }
 0x7b8   :  { %v3343_v62 = vpop.permute.xlu1 %3342 }
 0x7b9   :  { %v3349_v19 = vsel %vm3348_vm5, %v3347_v47, %v3343_v62 }
 0x7ba   :  { %3350 = vst.msk [vmem:[#allocation8] sm:$0xff] %vm119_vm0, %v3349_v19 }
 0x7c0   :  { %v3661_v25 = vpop.permute.xlu0 %3660 }
 0x7c1   :  { %v3671_v28 = vsel %vm477_vm3, %v3427_v54, %v3661_v25 }
 0x7c4   :  { %v3665_v22 = vpop.permute.xlu1 %3664 }
 0x7c5   :  { %v3672_v21 = vsel %vm3346_vm4, %v3671_v28, %v3665_v22 }
 0x7c8   :  { %v3669_v27 = vpop.permute.xlu0 %3668 }
 0x7c9   :  { %v3673_v20 = vsel %vm3348_vm5, %v3672_v21, %v3669_v27 }
 0x7ca   :  { %3675 = vst.msk [vmem:[#allocation8 + $0x8] sm:$0xff] %vm119_vm0, %v3673_v20 }
 0x7cb   :  { %4198 = shalt.err (!%p4195_p5)
}
 0x7cc   :  { %3687 = dma.vmem_to_hbm [thread:$0]  %s3682_s10, 256, %s4778_s4, [#allocation4], %s4215_s20, %s4215_s20, %s4216_s21  }
 0x7cd   :  { %4211 = dma.done.wait [#allocation4], 256  }
 0x7ce   :  { %4212 = vsyncadd [#allocation4], 4294967040 }
 0x7cf   :  { %3691 = vsyncpa [#allocation3], 1 }
 0x7d0   :  { %3692 = vsyncpa [#allocation6], 1 }
 0x7d1   :  { %3693 = vsyncpa [#allocation4], 1 }

</bundles_post_ra>
